<compile_context>
chip_gen: v7x
topology: tpu7x:2x2x1
jax: 0.10.0
libtpu: 0.0.40
codegen_flags: <defaults>
</compile_context>

<pallas_src>
import jax
import jax.numpy as jnp
from jax.experimental import pallas as pl
from jax.experimental.pallas import tpu as pltpu


def bottleneck_kernel(x_ref, w1_ref, b1_ref, w2_ref, b2_ref, w3_ref, b3_ref,
                      o_ref):
    H, W, Cin = x_ref.shape
    tH, _, Cout = o_ref.shape
    Cw = w1_ref.shape[1]

    i = pl.program_id(1)
    r0 = pl.multiple_of(i * tH, tH)

    # ---- row block plus a one-row halo (clamped at the image edges) ------
    x_mid = x_ref[pl.ds(r0, tH), :, :].astype(jnp.float32)          # (tH,W,Cin)
    x_top = x_ref[pl.ds(jnp.maximum(r0 - 1, 0), 1), :, :].astype(jnp.float32)
    x_bot = x_ref[pl.ds(jnp.minimum(r0 + tH, H - 1), 1), :, :].astype(jnp.float32)
    x_halo = jnp.concatenate([x_top, x_mid, x_bot], axis=0)         # (tH+2,W,Cin)

    # ---- conv1 (1x1, BN scale folded) + bias + ReLU ----------------------
    h1 = jnp.dot(x_halo.reshape((tH + 2) * W, Cin), w1_ref[...],
                 preferred_element_type=jnp.float32)
    h1 = jnp.maximum(h1 + b1_ref[...], 0.0).reshape(tH + 2, W, Cw)

    # conv2's zero padding applies to its *input* (post bn1+relu), so halo
    # rows that fall outside the image are zeroed here; same for W padding.
    top_ok = (r0 > 0).astype(jnp.float32)
    bot_ok = (r0 + tH < H).astype(jnp.float32)
    h1 = jnp.concatenate(
        [h1[0:1] * top_ok, h1[1:tH + 1], h1[tH + 1:tH + 2] * bot_ok], axis=0)
    zcol = jnp.zeros((tH + 2, 1, Cw), jnp.float32)
    h1p = jnp.concatenate([zcol, h1, zcol], axis=1)                 # (tH+2,W+2,Cw)

    # ---- conv2 (3x3, BN folded): single im2col matmul + bias + ReLU ------
    patch = jnp.concatenate(
        [h1p[dy:dy + tH, dx:dx + W, :] for dy in range(3) for dx in range(3)],
        axis=-1).reshape(tH * W, 9 * Cw)
    h2 = jnp.dot(patch, w2_ref[...], preferred_element_type=jnp.float32)
    h2 = jnp.maximum(h2 + b2_ref[...], 0.0)

    # ---- conv3 (1x1, BN folded) + bias + residual add + ReLU -------------
    h3 = jnp.dot(h2, w3_ref[...], preferred_element_type=jnp.float32)
    h3 = h3 + b3_ref[...] + x_mid.reshape(tH * W, Cin)
    o_ref[...] = jnp.maximum(h3, 0.0).reshape(tH, W, Cout).astype(o_ref.dtype)


def bottleneck_forward(x_nhwc, params, *, tile_h=8):
    N, H, W, Cin = x_nhwc.shape
    Cw = params["w1"].shape[1]
    Cout = params["w3"].shape[1]
    assert Cout == Cin, "identity residual requires inplanes == planes*expansion"

    tH = tile_h if H % tile_h == 0 else H
    grid = (N, H // tH)

    # Fold the BN scale into the conv weights (per output channel).
    w1 = (params["w1"] * params["s1"]).astype(jnp.float32)                   # (Cin,Cw)
    w2 = (params["w2"] * params["s2"].reshape(1, 1, 1, Cw)
          ).reshape(9 * Cw, Cw).astype(jnp.float32)                          # (9Cw,Cw)
    w3 = (params["w3"] * params["s3"]).astype(jnp.float32)                   # (Cw,Cout)
    b1 = params["b1"].astype(jnp.float32)
    b2 = params["b2"].astype(jnp.float32)
    b3 = params["b3"].astype(jnp.float32)

    flops = 2 * N * H * W * (Cin * Cw + 9 * Cw * Cw + Cw * Cout)
    bytes_accessed = 4 * (x_nhwc.size + N * H * W * Cout + w1.size + w2.size
                          + w3.size + b1.size + b2.size + b3.size)

    return pl.pallas_call(
        bottleneck_kernel,
        out_shape=jax.ShapeDtypeStruct((N, H, W, Cout), x_nhwc.dtype),
        grid_spec=pltpu.PrefetchScalarGridSpec(
            num_scalar_prefetch=0,
            grid=grid,
            in_specs=[
                # full image per batch item; only re-DMA'd when n changes
                pl.BlockSpec((None, H, W, Cin), lambda n, i: (n, 0, 0, 0)),
                pl.BlockSpec((Cin, Cw), lambda n, i: (0, 0)),
                pl.BlockSpec((1, Cw), lambda n, i: (0, 0)),
                pl.BlockSpec((9 * Cw, Cw), lambda n, i: (0, 0)),
                pl.BlockSpec((1, Cw), lambda n, i: (0, 0)),
                pl.BlockSpec((Cw, Cout), lambda n, i: (0, 0)),
                pl.BlockSpec((1, Cout), lambda n, i: (0, 0)),
            ],
            out_specs=pl.BlockSpec((None, tH, W, Cout),
                                   lambda n, i: (n, i, 0, 0)),
        ),
        compiler_params=pltpu.CompilerParams(
            dimension_semantics=("parallel", "parallel"),
            vmem_limit_bytes=32 * 1024 * 1024,
        ),
        cost_estimate=pl.CostEstimate(
            flops=flops, transcendentals=0, bytes_accessed=bytes_accessed),
    )(x_nhwc, w1, b1, w2, b2, w3, b3)


def bottleneck_ref(x_nhwc, p):
    """Pure-JAX reference (lax convs) for correctness checking."""
    conv = lambda x, w, pad: jax.lax.conv_general_dilated(
        x, w, window_strides=(1, 1), padding=pad,
        dimension_numbers=("NHWC", "HWIO", "NHWC"))
    h = conv(x_nhwc, p["w1"][None, None], "VALID")
    h = jnp.maximum(h * p["s1"] + p["b1"], 0.0)
    h = conv(h, p["w2"], "SAME")
    h = jnp.maximum(h * p["s2"] + p["b2"], 0.0)
    h = conv(h, p["w3"][None, None], "VALID")
    h = h * p["s3"] + p["b3"]
    return jnp.maximum(h + x_nhwc, 0.0)


if __name__ == "__main__":
    # Bottleneck(inplanes=16, planes=4): width=4, out channels = 16 == inplanes.
    inplanes, planes, base_width, groups, expansion = 16, 4, 64, 1, 4
    width = int(planes * (base_width / 64.0)) * groups      # 4
    out_ch = planes * expansion                              # 16
    N, H, W = 2, 16, 16
    eps = 1e-5

    key = jax.random.PRNGKey(0)
    ks = jax.random.split(key, 16)

    def bn_fold(kg, kb, km, kv, c):
        gamma = 1.0 + 0.1 * jax.random.normal(kg, (c,), jnp.float32)
        beta = 0.1 * jax.random.normal(kb, (c,), jnp.float32)
        mean = 0.1 * jax.random.normal(km, (c,), jnp.float32)
        var = jnp.abs(1.0 + 0.1 * jax.random.normal(kv, (c,), jnp.float32))
        s = gamma / jnp.sqrt(var + eps)
        b = beta - mean * s
        return s.reshape(1, c), b.reshape(1, c)

    w1 = 0.1 * jax.random.normal(ks[0], (inplanes, width), jnp.float32)
    w2 = 0.1 * jax.random.normal(ks[1], (3, 3, width, width), jnp.float32)
    w3 = 0.1 * jax.random.normal(ks[2], (width, out_ch), jnp.float32)
    s1, b1 = bn_fold(ks[3], ks[4], ks[5], ks[6], width)
    s2, b2 = bn_fold(ks[7], ks[8], ks[9], ks[10], width)
    s3, b3 = bn_fold(ks[11], ks[12], ks[13], ks[14], out_ch)
    params = dict(w1=w1, s1=s1, b1=b1, w2=w2, s2=s2, b2=b2,
                  w3=w3, s3=s3, b3=b3)

    # PyTorch-style input is NCHW; the kernel consumes NHWC.
    x_nchw = jax.random.normal(ks[15], (N, inplanes, H, W), jnp.float32)
    x_nhwc = jnp.transpose(x_nchw, (0, 2, 3, 1))

    out = jax.block_until_ready(bottleneck_forward(x_nhwc, params))
    ref = jax.block_until_ready(bottleneck_ref(x_nhwc, params))

    assert out.shape == (N, H, W, out_ch)
    max_err = float(jnp.max(jnp.abs(out - ref)))
    assert jnp.allclose(out, ref, rtol=1e-4, atol=1e-4), f"max_err={max_err}"
    print("KERNEL_OK")
</pallas_src>

<mosaic_0001>
module attributes {stable_mosaic.version = 11 : i64} {
  func.func @bottleneck_kernel(%arg0: i32, %arg1: i32, %arg2: memref<1x16x16x16xf32, #tpu.memory_space<vmem>>, %arg3: memref<16x4xf32, #tpu.memory_space<vmem>>, %arg4: memref<1x4xf32, #tpu.memory_space<vmem>>, %arg5: memref<36x4xf32, #tpu.memory_space<vmem>>, %arg6: memref<1x4xf32, #tpu.memory_space<vmem>>, %arg7: memref<4x16xf32, #tpu.memory_space<vmem>>, %arg8: memref<1x16xf32, #tpu.memory_space<vmem>>, %arg9: memref<1x8x16x16xf32, #tpu.memory_space<vmem>>) attributes {dimension_semantics = [#tpu.dimension_semantics<parallel>, #tpu.dimension_semantics<parallel>], iteration_bounds = array<i64: 2, 2>, scalar_prefetch = 0 : i64, scratch_operands = 0 : i64, tpu.core_type = #tpu.core_type<tc>, window_params = [{transform_indices = @transform_0, window_bounds = array<i64: 1, 16, 16, 16>}, {pipeline_mode = #tpu.pipeline_mode<synchronous>, transform_indices = @transform_1, window_bounds = array<i64: 16, 4>}, {pipeline_mode = #tpu.pipeline_mode<synchronous>, transform_indices = @transform_2, window_bounds = array<i64: 1, 4>}, {pipeline_mode = #tpu.pipeline_mode<synchronous>, transform_indices = @transform_3, window_bounds = array<i64: 36, 4>}, {pipeline_mode = #tpu.pipeline_mode<synchronous>, transform_indices = @transform_4, window_bounds = array<i64: 1, 4>}, {pipeline_mode = #tpu.pipeline_mode<synchronous>, transform_indices = @transform_5, window_bounds = array<i64: 4, 16>}, {pipeline_mode = #tpu.pipeline_mode<synchronous>, transform_indices = @transform_6, window_bounds = array<i64: 1, 16>}, {transform_indices = @transform_7, window_bounds = array<i64: 1, 8, 16, 16>}]} {
    %c8_i32 = arith.constant 8 : i32
    %0 = arith.muli %arg1, %c8_i32 : i32
    %1 = tpu.assume_multiple %0, 8 : i32
    %c0 = arith.constant 0 : index
    %2 = arith.index_cast %1 : i32 to index
    %c0_0 = arith.constant 0 : index
    %c0_1 = arith.constant 0 : index
    %3 = vector.load %arg2[%c0, %2, %c0_0, %c0_1] : memref<1x16x16x16xf32, #tpu.memory_space<vmem>>, vector<1x8x16x16xf32>
    %4 = vector.shape_cast %3 : vector<1x8x16x16xf32> to vector<8x16x16xf32>
    %c1_i32 = arith.constant 1 : i32
    %5 = arith.subi %1, %c1_i32 : i32
    %c0_i32 = arith.constant 0 : i32
    %6 = arith.maxsi %5, %c0_i32 : i32
    %c0_2 = arith.constant 0 : index
    %7 = arith.index_cast %6 : i32 to index
    %c0_3 = arith.constant 0 : index
    %c0_4 = arith.constant 0 : index
    %8 = vector.load %arg2[%c0_2, %7, %c0_3, %c0_4] : memref<1x16x16x16xf32, #tpu.memory_space<vmem>>, vector<1x1x16x16xf32>
    %9 = vector.shape_cast %8 : vector<1x1x16x16xf32> to vector<1x16x16xf32>
    %c8_i32_5 = arith.constant 8 : i32
    %10 = arith.addi %1, %c8_i32_5 : i32
    %c15_i32 = arith.constant 15 : i32
    %11 = arith.minsi %10, %c15_i32 : i32
    %c0_6 = arith.constant 0 : index
    %12 = arith.index_cast %11 : i32 to index
    %c0_7 = arith.constant 0 : index
    %c0_8 = arith.constant 0 : index
    %13 = vector.load %arg2[%c0_6, %12, %c0_7, %c0_8] : memref<1x16x16x16xf32, #tpu.memory_space<vmem>>, vector<1x1x16x16xf32>
    %14 = vector.shape_cast %13 : vector<1x1x16x16xf32> to vector<1x16x16xf32>
    %15 = tpu.concatenate %9, %4, %14 in 0 : vector<1x16x16xf32>, vector<8x16x16xf32>, vector<1x16x16xf32> -> vector<10x16x16xf32>
    %16 = vector.shape_cast %15 : vector<10x16x16xf32> to vector<160x16xf32>
    %c0_9 = arith.constant 0 : index
    %c0_10 = arith.constant 0 : index
    %17 = vector.load %arg3[%c0_9, %c0_10] : memref<16x4xf32, #tpu.memory_space<vmem>>, vector<16x4xf32>
    %cst = arith.constant dense<0.000000e+00> : vector<160x4xf32>
    %18 = tpu.matmul %16, %17, %cst {dimension_numbers = #tpu.dot_dimension_numbers<[1], [0], [0], [1], [0, 0, 1, 1], [], []>} : vector<160x16xf32>, vector<16x4xf32>, vector<160x4xf32> -> vector<160x4xf32>
    %c0_11 = arith.constant 0 : index
    %c0_12 = arith.constant 0 : index
    %19 = vector.load %arg4[%c0_11, %c0_12] : memref<1x4xf32, #tpu.memory_space<vmem>>, vector<1x4xf32>
    %20 = vector.broadcast %19 : vector<1x4xf32> to vector<160x4xf32>
    %21 = arith.addf %18, %20 : vector<160x4xf32>
    %cst_13 = arith.constant 0.000000e+00 : f32
    %22 = vector.broadcast %cst_13 : f32 to vector<160x4xf32>
    %23 = arith.maximumf %21, %22 : vector<160x4xf32>
    %24 = vector.shape_cast %23 : vector<160x4xf32> to vector<10x16x4xf32>
    %c0_i32_14 = arith.constant 0 : i32
    %25 = arith.cmpi sgt, %1, %c0_i32_14 : i32
    %26 = arith.extui %25 : i1 to i32
    %27 = arith.sitofp %26 : i32 to f32
    %c8_i32_15 = arith.constant 8 : i32
    %28 = arith.addi %1, %c8_i32_15 : i32
    %c16_i32 = arith.constant 16 : i32
    %29 = arith.cmpi slt, %28, %c16_i32 : i32
    %30 = arith.extui %29 : i1 to i32
    %31 = arith.sitofp %30 : i32 to f32
    %32 = vector.extract_strided_slice %24 {offsets = [0, 0, 0], sizes = [1, 16, 4], strides = [1, 1, 1]} : vector<10x16x4xf32> to vector<1x16x4xf32>
    %33 = vector.broadcast %27 : f32 to vector<1x16x4xf32>
    %34 = arith.mulf %32, %33 : vector<1x16x4xf32>
    %35 = vector.extract_strided_slice %24 {offsets = [1, 0, 0], sizes = [8, 16, 4], strides = [1, 1, 1]} : vector<10x16x4xf32> to vector<8x16x4xf32>
    %36 = vector.extract_strided_slice %24 {offsets = [9, 0, 0], sizes = [1, 16, 4], strides = [1, 1, 1]} : vector<10x16x4xf32> to vector<1x16x4xf32>
    %37 = vector.broadcast %31 : f32 to vector<1x16x4xf32>
    %38 = arith.mulf %36, %37 : vector<1x16x4xf32>
    %39 = tpu.concatenate %34, %35, %38 in 0 : vector<1x16x4xf32>, vector<8x16x4xf32>, vector<1x16x4xf32> -> vector<10x16x4xf32>
    %cst_16 = arith.constant 0.000000e+00 : f32
    %40 = vector.broadcast %cst_16 : f32 to vector<10x1x4xf32>
    %41 = tpu.concatenate %40, %39, %40 in 1 : vector<10x1x4xf32>, vector<10x16x4xf32>, vector<10x1x4xf32> -> vector<10x18x4xf32>
    %42 = vector.extract_strided_slice %41 {offsets = [0, 0, 0], sizes = [8, 16, 4], strides = [1, 1, 1]} : vector<10x18x4xf32> to vector<8x16x4xf32>
    %43 = vector.extract_strided_slice %41 {offsets = [0, 1, 0], sizes = [8, 16, 4], strides = [1, 1, 1]} : vector<10x18x4xf32> to vector<8x16x4xf32>
    %44 = vector.extract_strided_slice %41 {offsets = [0, 2, 0], sizes = [8, 16, 4], strides = [1, 1, 1]} : vector<10x18x4xf32> to vector<8x16x4xf32>
    %45 = vector.extract_strided_slice %41 {offsets = [1, 0, 0], sizes = [8, 16, 4], strides = [1, 1, 1]} : vector<10x18x4xf32> to vector<8x16x4xf32>
    %46 = vector.extract_strided_slice %41 {offsets = [1, 1, 0], sizes = [8, 16, 4], strides = [1, 1, 1]} : vector<10x18x4xf32> to vector<8x16x4xf32>
    %47 = vector.extract_strided_slice %41 {offsets = [1, 2, 0], sizes = [8, 16, 4], strides = [1, 1, 1]} : vector<10x18x4xf32> to vector<8x16x4xf32>
    %48 = vector.extract_strided_slice %41 {offsets = [2, 0, 0], sizes = [8, 16, 4], strides = [1, 1, 1]} : vector<10x18x4xf32> to vector<8x16x4xf32>
    %49 = vector.extract_strided_slice %41 {offsets = [2, 1, 0], sizes = [8, 16, 4], strides = [1, 1, 1]} : vector<10x18x4xf32> to vector<8x16x4xf32>
    %50 = vector.extract_strided_slice %41 {offsets = [2, 2, 0], sizes = [8, 16, 4], strides = [1, 1, 1]} : vector<10x18x4xf32> to vector<8x16x4xf32>
    %51 = tpu.concatenate %42, %43, %44, %45, %46, %47, %48, %49, %50 in 2 : vector<8x16x4xf32>, vector<8x16x4xf32>, vector<8x16x4xf32>, vector<8x16x4xf32>, vector<8x16x4xf32>, vector<8x16x4xf32>, vector<8x16x4xf32>, vector<8x16x4xf32>, vector<8x16x4xf32> -> vector<8x16x36xf32>
    %52 = vector.shape_cast %51 : vector<8x16x36xf32> to vector<128x36xf32>
    %c0_17 = arith.constant 0 : index
    %c0_18 = arith.constant 0 : index
    %53 = vector.load %arg5[%c0_17, %c0_18] : memref<36x4xf32, #tpu.memory_space<vmem>>, vector<36x4xf32>
    %cst_19 = arith.constant dense<0.000000e+00> : vector<128x4xf32>
    %54 = tpu.matmul %52, %53, %cst_19 {dimension_numbers = #tpu.dot_dimension_numbers<[1], [0], [0], [1], [0, 0, 1, 1], [], []>} : vector<128x36xf32>, vector<36x4xf32>, vector<128x4xf32> -> vector<128x4xf32>
    %c0_20 = arith.constant 0 : index
    %c0_21 = arith.constant 0 : index
    %55 = vector.load %arg6[%c0_20, %c0_21] : memref<1x4xf32, #tpu.memory_space<vmem>>, vector<1x4xf32>
    %56 = vector.broadcast %55 : vector<1x4xf32> to vector<128x4xf32>
    %57 = arith.addf %54, %56 : vector<128x4xf32>
    %cst_22 = arith.constant 0.000000e+00 : f32
    %58 = vector.broadcast %cst_22 : f32 to vector<128x4xf32>
    %59 = arith.maximumf %57, %58 : vector<128x4xf32>
    %c0_23 = arith.constant 0 : index
    %c0_24 = arith.constant 0 : index
    %60 = vector.load %arg7[%c0_23, %c0_24] : memref<4x16xf32, #tpu.memory_space<vmem>>, vector<4x16xf32>
    %cst_25 = arith.constant dense<0.000000e+00> : vector<128x16xf32>
    %61 = tpu.matmul %59, %60, %cst_25 {dimension_numbers = #tpu.dot_dimension_numbers<[1], [0], [0], [1], [0, 0, 1, 1], [], []>} : vector<128x4xf32>, vector<4x16xf32>, vector<128x16xf32> -> vector<128x16xf32>
    %c0_26 = arith.constant 0 : index
    %c0_27 = arith.constant 0 : index
    %62 = vector.load %arg8[%c0_26, %c0_27] : memref<1x16xf32, #tpu.memory_space<vmem>>, vector<1x16xf32>
    %63 = vector.broadcast %62 : vector<1x16xf32> to vector<128x16xf32>
    %64 = arith.addf %61, %63 : vector<128x16xf32>
    %65 = vector.shape_cast %4 : vector<8x16x16xf32> to vector<128x16xf32>
    %66 = arith.addf %64, %65 : vector<128x16xf32>
    %cst_28 = arith.constant 0.000000e+00 : f32
    %67 = vector.broadcast %cst_28 : f32 to vector<128x16xf32>
    %68 = arith.maximumf %66, %67 : vector<128x16xf32>
    %69 = vector.shape_cast %68 : vector<128x16xf32> to vector<8x16x16xf32>
    %c0_29 = arith.constant 0 : index
    %c0_30 = arith.constant 0 : index
    %c0_31 = arith.constant 0 : index
    %c0_32 = arith.constant 0 : index
    %70 = vector.load %arg9[%c0_29, %c0_30, %c0_31, %c0_32] : memref<1x8x16x16xf32, #tpu.memory_space<vmem>>, vector<1x8x16x16xf32>
    %71 = vector.shape_cast %70 : vector<1x8x16x16xf32> to vector<8x16x16xf32>
    %72 = vector.shape_cast %69 : vector<8x16x16xf32> to vector<1x8x16x16xf32>
    tpu.vector_store %arg9[%c0_29, %c0_30, %c0_31, %c0_32], %72 {strides = array<i32>} : memref<1x8x16x16xf32, #tpu.memory_space<vmem>>, vector<1x8x16x16xf32>,
    return
  }
  func.func @transform_0(%arg0: i32, %arg1: i32) -> (i32, i32, i32, i32) {
    %c0_i32 = arith.constant 0 : i32
    %c0_i32_0 = arith.constant 0 : i32
    %c0_i32_1 = arith.constant 0 : i32
    %c0_i32_2 = arith.constant 0 : i32
    return %arg0, %c0_i32, %c0_i32_0, %c0_i32_1 : i32, i32, i32, i32
  }
  func.func @transform_1(%arg0: i32, %arg1: i32) -> (i32, i32) {
    %c0_i32 = arith.constant 0 : i32
    %c0_i32_0 = arith.constant 0 : i32
    %c0_i32_1 = arith.constant 0 : i32
    return %c0_i32, %c0_i32_0 : i32, i32
  }
  func.func @transform_2(%arg0: i32, %arg1: i32) -> (i32, i32) {
    %c0_i32 = arith.constant 0 : i32
    %c0_i32_0 = arith.constant 0 : i32
    %c0_i32_1 = arith.constant 0 : i32
    return %c0_i32, %c0_i32_0 : i32, i32
  }
  func.func @transform_3(%arg0: i32, %arg1: i32) -> (i32, i32) {
    %c0_i32 = arith.constant 0 : i32
    %c0_i32_0 = arith.constant 0 : i32
    %c0_i32_1 = arith.constant 0 : i32
    return %c0_i32, %c0_i32_0 : i32, i32
  }
  func.func @transform_4(%arg0: i32, %arg1: i32) -> (i32, i32) {
    %c0_i32 = arith.constant 0 : i32
    %c0_i32_0 = arith.constant 0 : i32
    %c0_i32_1 = arith.constant 0 : i32
    return %c0_i32, %c0_i32_0 : i32, i32
  }
  func.func @transform_5(%arg0: i32, %arg1: i32) -> (i32, i32) {
    %c0_i32 = arith.constant 0 : i32
    %c0_i32_0 = arith.constant 0 : i32
    %c0_i32_1 = arith.constant 0 : i32
    return %c0_i32, %c0_i32_0 : i32, i32
  }
  func.func @transform_6(%arg0: i32, %arg1: i32) -> (i32, i32) {
    %c0_i32 = arith.constant 0 : i32
    %c0_i32_0 = arith.constant 0 : i32
    %c0_i32_1 = arith.constant 0 : i32
    return %c0_i32, %c0_i32_0 : i32, i32
  }
  func.func @transform_7(%arg0: i32, %arg1: i32) -> (i32, i32, i32, i32) {
    %c0_i32 = arith.constant 0 : i32
    %c0_i32_0 = arith.constant 0 : i32
    %c0_i32_1 = arith.constant 0 : i32
    return %arg0, %arg1, %c0_i32, %c0_i32_0 : i32, i32, i32, i32
  }
}

</mosaic_0001>

<bundles_post_ra>
// kernel: tpu_custom_call.1
= control target key start
LH: loop header
LB: loop body
LE: loop exit
PB: predicated region body
PF: predicated region fallthrough
CT: control target
= control target key end

     0   :  { %s3575_s0 = inlined_call_operand.hbm [shape: f32[2,16,16,16], index: 0, kind: input, shape index: {}]   ;;  %s3576_s1 = inlined_call_operand.vmem [shape: f32[16,4], index: 1, kind: input, shape index: {}]   ;;  %s3577_s2 = inlined_call_operand.vmem [shape: f32[1,4], index: 2, kind: input, shape index: {}]   ;;  %s3578_s3 = inlined_call_operand.vmem [shape: f32[36,4], index: 3, kind: input, shape index: {}]   ;;  %s3579_s4 = inlined_call_operand.vmem [shape: f32[1,4], index: 4, kind: input, shape index: {}]   ;;  %s3580_s5 = inlined_call_operand.vmem [shape: f32[4,16], index: 5, kind: input, shape index: {}]   ;;  %s3581_s6 = inlined_call_operand.vmem [shape: f32[1,16], index: 6, kind: input, shape index: {}]   ;;  %s3582_s7 = inlined_call_operand.hbm [shape: f32[2,16,16,16], index: 7, kind: output, shape index: {}]  }
   0x1   :  { %3593 = sst [smem:[#allocation12_spill]] %s3582_s7 }
   0x2   :  { %12 = vsyncpa [#allocation3], 0 }
   0x3   :  { %14 = vsyncpa [#allocation3 + $0x1], 0 }
   0x4   :  { %15 = vsyncpa [#allocation4], 0 }
   0x5   :  { %17 = vsyncpa [#allocation4 + $0x1], 0  ;;  %s2530_s24 = smov 0   ;;  %s2532_s25 = smov 0  }
   0x6   :  { %s2534_s26 = smov 0   ;;  %s2536_s27 = smov 0  }
   0x7   :  { %s2538_s28 = smov 0   ;;  %s2540_s29 = smov 0  }
   0x8   :  { %s2542_s30 = smov 0   ;;  %s2544_s8 = smov 0  }
   0x9   :  { %s2546_s9 = smov 0   ;;  %s2548_s10 = smov 0  }
   0xa   :  { %s2550_s11 = smov 0  }
   0xb LB: > { %3594 = sst [smem:[#allocation8_spill]] %s2467_s9  ;;  %s1940_s12 = sadd.s32 4294967295, %s2475_s11   ;;  %s2475_s11 = sphi %s2550_s11, %s23_s11   ;;  %s2471_s10 = sphi %s2548_s10, %s3613_s10   ;;  %s2467_s9 = sphi %s2546_s9, %s3612_s9   ;;  %s2463_s8 = sphi %s2544_s8, %s3611_s8   ;;  %s2459_s30 = sphi %s2542_s30, %s3610_s30   ;;  %s2455_s29 = sphi %s2540_s29, %s3619_s29   ;;  %s2451_s28 = sphi %s2538_s28, %s3618_s28   ;;  %s2447_s27 = sphi %s2536_s27, %s3617_s27   ;;  %s2443_s26 = sphi %s2534_s26, %s3616_s26   ;;  %s2439_s25 = sphi %s2532_s25, %s3615_s25   ;;  %s2435_s24 = sphi %s2530_s24, %s3614_s24  }
   0xc   : > { %3595 = sst [smem:[#allocation9_spill]] %s2471_s10  ;;  %s1941_s13 = sadd.s32 4294967294, %s2475_s11  }
   0xd   : > { %s32_s14 = sadd.s32 1, %s2467_s9  ;;  %s35_s15 = sadd.s32 1, %s2471_s10 }
   0xe   : > { %p33_p0 = scmp.ge.s32.totalorder %s32_s14, 2  ;;  %s42_s16 = sadd.s32 1, %s2455_s29 }
   0xf   : > { %p49_p1 = scmp.ne.s32.totalorder %s2455_s29, %s2451_s28  ;;  %p50_p2 = scmp.eq.s32.totalorder %s2475_s11, 0 }
  0x10   : > { %s3621_s14 = smov (%p33_p0, %s32_s14), 0  ;;  %s3623_s15 = smov (!%p33_p0, %s35_s15), %s2471_s10 }
  0x11   : > { %3596 = sst [smem:[#allocation10_spill]] %s3621_s14  ;;  %p2594_p3 = por %p50_p2, %p49_p1 }
  0x12   : > { %p55_p4 = scmp.ne.s32.totalorder %s2451_s28, %s2447_s27  ;;  %p37_p5 = scmp.ge.s32.totalorder %s3623_s15, 2 }
  0x13   : > { %p56_p6 = scmp.eq.s32.totalorder %s1940_s12, 0  ;;  %s192_s18 = ssub.s32 %s2467_s9, %s3621_s14 }
  0x14   : > { %s196_s19 = sadd.s32 1, %s2443_s26  ;;  %s3625_s15 = smov (%p37_p5, %s3623_s15), 0 }
  0x15   : > { %3598 = sst [smem:[#allocation11_spill]] %s3625_s15  ;;  %p2604_p7 = por %p56_p6, %p55_p4 }
  0x16   : > { %p206_p8 = scmp.ne.s32.totalorder %s2443_s26, %s2439_s25  ;;  %s39_s21 = ssub.s32 %s2471_s10, %s3625_s15 }
  0x17   : > { %p207_p9 = scmp.eq.s32.totalorder %s1940_s12, 3  ;;  %p40_p10 = scmp.eq.s32.totalorder %s39_s21, 0 }
  0x18   : > { %s193_s22 = sor.u32 %s192_s18, %s39_s21  ;;  %p212_p13 = scmp.ne.s32.totalorder %s2439_s25, %s2435_s24 }
  0x19   : > { %p194_p11 = scmp.eq.s32.totalorder %s193_s22, 0  ;;  %p2612_p12 = por %p207_p9, %p206_p8 }
  0x1a   : > { %s2617_s27 = scalar_select %p40_p10, %s2455_s29, %s42_s16  }
  0x1b   : > { %s3600_s23 = scalar_select %p2612_p12, 1, 0 }
  0x1c   : > { %s2620_s14 = scalar_select %p194_p11, %s2443_s26, %s196_s19  }
  0x1d   : > { %p213_p0 = scmp.eq.s32.totalorder %s1941_s13, 3  ;;  %p2206_p1 = scmp.lt.s32.totalorder %s2475_s11, 4 }
  0x1e   : > { %s251_s12 = sand.u32 1, %s2455_s29   ;;  %s2019_s21 = sshll.u32 %s2471_s10, 12 }
  0x1f   : > { %p2625_p2 = por %p213_p0, %p212_p13  ;;  %s1944_s18 = sshll.u32 %s251_s12, 8 }
  0x20   : > { %s2634_s7 = scalar_lea.hbm %s3575_s0, %s2019_s21  ;;  %s255_s16 = scalar_lea.vmem [#allocation2], %s1944_s18 }
  0x21   : > { %s3601_s9 = scalar_select %p2625_p2, 1, 0 }
  0x22   : > { %s262_s19 = sshll.u32 %s255_s16, 4  ;;  %p2640_p4 = pnand %p2206_p1, %p2594_p3  ;;  %s2636_s19 = int_to_ptr.vmem [resolvable:$true] %s262_s19 }
  0x23   : > { %s2645_s10 = scalar_lea.sflag [#allocation3], %s251_s12  ;;  %s2323_s15 = scalar_lea.hbm %s2634_s7, 4096 }
  0x24   : > { %p2324_p6 = scmp.ne.s32.totalorder %s2634_s7, %s2323_s15  ;;  %p2325_p8 = pneg %p2640_p4 }
  0x25   : > { %s2328_s17 = scalar_lea.hbm %s3575_s0, 8192  ;;  %p2329_p3 = scmp.lt.u32.totalorder %s2634_s7, %s3575_s0 }
  0x26   : > { %p2326_p9 = pnand %p2325_p8, %p2324_p6  ;;  %p2330_p11 = scmp.lt.u32.totalorder %s2328_s17, %s2323_s15 }
  0x27   : > { %p2332_p0 = scmp.lt.u32.totalorder %s2323_s15, %s2634_s7 }
  0x28   : > { %p2327_p10 = pneg %p2326_p9  ;;  %p2331_p13 = por %p2330_p11, %p2329_p3 }
  0x2a   : > { %p2333_p1 = por %p2332_p0, %p2331_p13 }
  0x2c   : > { %p2334_p5 = pnand %p2333_p1, %p2327_p10 }
  0x2e   : > { %2337 = shalt.err (!%p2334_p5)
}
  0x2f   : > { %s2338_s12 = scalar_lea.vmem %s2636_s19, 4096  ;;  %s2477_s18 = smov [#allocation2]  }
  0x30   : > { %p2339_p6 = scmp.ne.s32.totalorder %s2636_s19, %s2338_s12  ;;  %s2343_s21 = sshll.u32 %s2477_s18, 4  ;;  %s2344_s21 = int_to_ptr.vmem [resolvable:$false] %s2343_s21 }
  0x31   : > { %s2345_s22 = scalar_lea.vmem %s2344_s21, 8192  ;;  %p2346_p12 = scmp.lt.s32.totalorder %s2636_s19, %s2344_s21 }
  0x32   : > { %p2341_p9 = pnand %p2339_p6, %p2325_p8  ;;  %p2347_p3 = scmp.lt.s32.totalorder %s2345_s22, %s2338_s12 }
  0x34   : > { %p2342_p2 = pneg %p2341_p9  ;;  %p2348_p11 = por %p2347_p3, %p2346_p12 }
  0x36   : > { %p2349_p13 = pnand %p2348_p11, %p2342_p2 }
  0x38   : > { %2352 = shalt.err (!%p2349_p13)
}
  0x39   : > { %s2478_s15 = smov 128   ;;  %s2479_s17 = smov 8  }
  0x3a   : > { %2201 = dma.hbm_to_vmem [thread:$0]  (!%p2640_p4), %s2634_s7, 4096, %s2636_s19, %s2645_s10, %s2478_s15, %s2478_s15, %s2479_s17  }
  0x3b   : > { %p270_p5 = scmp.lt.s32.totalorder %s2475_s11, 5  ;;  %p3603_p8 = scmp.ge.s32.totalorder %s2475_s11, 1 }
  0x3d   : > { %p271_p10 = pnand %p3603_p8, %p270_p5 }
  0x3e   : > { %s276_s16 = sand.u32 (!%p271_p10), 1, %s2451_s28  }
  0x3f   : > { %274 = sbr.rel (%p271_p10) target bundleno = 1125 (0x465), region = 48  ;;  %s1948_s12 = sshll.u32 (!%p271_p10), %s276_s16, 8 }
  0x40   : > { %s277_s18 = scalar_lea.sflag (!%p271_p10), [#allocation3], %s276_s16  ;;  %s2677_s21 = scalar_lea.vmem (!%p271_p10), [#allocation2], %s1948_s12 }
  0x46   : > { %2426 = dma.done.wait (%p2604_p7), %s277_s18, 4096  }
  0x47   : > { %2428 = vsyncadd (%p2604_p7), %s277_s18, 4294963200  ;;  %s2684_s7 = sshll.u32 %s2459_s30, 3  ;;  %vm354_vm0 = vcmask 130048   ;;  %s2020_s13 = sshll.u32 %s2459_s30, 7  ;;  %v345_v0 = vld [vmem:[%s3576_s1] sm:$0xff]  ;;  %v346_v1 = vld [vmem:[%s3576_s1 + $0x8] sm:$0xff] }
  0x48   : > { %s1952_s10 = sadd.s32 4294967295, %s2684_s7  ;;  %v2176_v2 = vpack.c.bf16 %v346_v1, %v345_v0  ;;  %s2697_s12 = scalar_lea.vmem %s2677_s21, %s2020_s13 [#allocation2]  ;;  %v2744_v23 = vld [vmem:[%s3577_s2] ss:$0 sm:$0xff]  ;;  %vm632_vm1 = vcmask 1040384   ;;  %vm727_vm2 = vcmask 1046528   ;;  %vm816_vm3 = vcmask 1045504  }
  0x49   : > { %p332_p12 = scmp.gt.s32.totalorder %s1952_s10, 0  ;;  %v315_v5 = vld [vmem:[%s2697_s12] sm:$0xff]  ;;  %v316_v6 = vld [vmem:[%s2697_s12 + $0x8] sm:$0xff]  ;;  %v317_v7 = vld [vmem:[%s2697_s12 + $0x10] sm:$0xff]  ;;  %s2733_s18 = sadd.s32 8, %s2684_s7  ;;  %vm1413_vm4 = vcmask 1043456  }
  0x4a   : > { %2177 = vmatprep.subr.bf16.mxu0 %v2176_v2  ;;  %v318_v8 = vld [vmem:[%s2697_s12 + $0x18] sm:$0xff]  ;;  %v319_v9 = vld [vmem:[%s2697_s12 + $0x20] sm:$0xff]  ;;  %v320_v10 = vld [vmem:[%s2697_s12 + $0x28] sm:$0xff]  ;;  %p339_p7 = scmp.lt.s32.totalorder %s2733_s18, 15  ;;  %p600_p2 = scmp.gt.s32.totalorder %s2684_s7, 0  ;;  %vm1217_vm5 = vcmask 31744  }
  0x4b   : > { %s3627_s10 = smov (!%p332_p12, %s1952_s10), 0  ;;  %2179 = vmatpush3.bf16.msra.mxu0 %v2176_v2  ;;  %v321_v11 = vld [vmem:[%s2697_s12 + $0x30] sm:$0xff]  ;;  %v322_v12 = vld [vmem:[%s2697_s12 + $0x38] sm:$0xff]  ;;  %v323_v13 = vld [vmem:[%s2697_s12 + $0x40] sm:$0xff]  ;;  %s3591_s7 = smov 4   ;;  %vm1234_vm6 = vcmask 64512  }
  0x4c   : > { %s1953_s19 = sshll.u32 %s3627_s10, 4  ;;  %v324_v14 = vld [vmem:[%s2697_s12 + $0x48] sm:$0xff]  ;;  %v325_v15 = vld [vmem:[%s2697_s12 + $0x50] sm:$0xff]  ;;  %v326_v16 = vld [vmem:[%s2697_s12 + $0x58] sm:$0xff]  ;;  %s2486_s17 = smov 28   ;;  %vm1251_vm7 = vcmask 97280  }
  0x4d   : > { %s335_s16 = scalar_lea.vmem %s2677_s21, %s1953_s19 [#allocation2]  ;;  %v327_v17 = vld [vmem:[%s2697_s12 + $0x60] sm:$0xff]  ;;  %v328_v18 = vld [vmem:[%s2697_s12 + $0x68] sm:$0xff]  ;;  %v329_v19 = vld [vmem:[%s2697_s12 + $0x70] sm:$0xff]  ;;  %s3605_s15 = smov 20   ;;  %vm1284_vm8 = vcmask 162816   ;;  %vm1301_vm9 = vcmask 195584  }
  0x4e   : > { %v336_v3 = vld [vmem:[%s335_s16] sm:$0xff]  ;;  %v337_v4 = vld [vmem:[%s335_s16 + $0x8] sm:$0xff]  ;;  %v330_v20 = vld [vmem:[%s2697_s12 + $0x78] sm:$0xff]  ;;  %s340_s10 = scalar_select %p339_p7, %s2733_s18, 15  ;;  %vm1318_vm10 = vcmask 228352   ;;  %vm1335_vm11 = vcmask 261120  }
  0x4f   : > { %2086 = vmatprep.mubr.msk.f32.mxu0 %vm354_vm0, %v336_v3  ;;  %s601_s22 = scalar_select %p600_p2, 1, 0  ;;  %vm1364_vm12 = vcmask 293888  }
  0x50   : > { %2087 = vmatmul.mubr.msk.f32.vlgmr.msra.gmra.mrb[0].mxu0 %vm354_vm0, %v337_v4  ;;  %s1954_s19 = sshll.u32 %s340_s10, 4  ;;  %s2482_s16 = smov 8  }
  0x51   : > { %2089 = vmatprep.mubr.msk.f32.mxu0 %vm354_vm0, %v315_v5  ;;  %s342_s13 = scalar_lea.vmem %s2677_s21, %s1954_s19 [#allocation2]  ;;  %s602_s20 = scvt.s32.f32 %s601_s22 }
  0x52   : > { %v343_v21 = vld [vmem:[%s342_s13] sm:$0xff]  ;;  %v344_v22 = vld [vmem:[%s342_s13 + $0x8] sm:$0xff]  ;;  %s2480_s21 = smov 12   ;;  %s2483_s10 = smov 16  }
  0x53   : > { %v606_v27 = vstv %s602_s20  ;;  %s3589_s19 = smov 20   ;;  %s2485_s13 = smov 24  }
  0x54   : > { %2090 = vmatmul.mubr.msk.f32.gmra.mrb[2].mxu0 %vm354_vm0, %v316_v6  ;;  %s2487_s20 = smov 32   ;;  %s3604_s22 = smov 4  }
  0x55   : > { %2092 = vmatprep.mubr.msk.f32.mxu0 %vm354_vm0, %v317_v7  ;;  %p603_p4 = scmp.lt.s32.totalorder %s2733_s18, 16  ;;  %s2015_s18 = sshll.u32 %s2463_s8, 5 }
  0x56   : > { %p3607_p1 = scmp.ne.s32.totalorder %s3600_s23, 0 }
  0x58   : > { %2093 = vmatmul.mubr.msk.f32.gmra.mrb[4].mxu0 %vm354_vm0, %v318_v8 }
  0x59   : > { %2095 = vmatprep.mubr.msk.f32.mxu0 %vm354_vm0, %v319_v9 }
  0x5c   : > { %2096 = vmatmul.mubr.msk.f32.gmra.mrb[6].mxu0 %vm354_vm0, %v320_v10 }
  0x5d   : > { %2098 = vmatprep.mubr.msk.f32.mxu0 %vm354_vm0, %v321_v11 }
  0x60   : > { %2099 = vmatmul.mubr.msk.f32.gmra.mrb[8].mxu0 %vm354_vm0, %v322_v12 }
  0x61   : > { %2101 = vmatprep.mubr.msk.f32.mxu0 %vm354_vm0, %v323_v13 }
  0x64   : > { %2102 = vmatmul.mubr.msk.f32.gmra.mrb[10].mxu0 %vm354_vm0, %v324_v14 }
  0x65   : > { %2104 = vmatprep.mubr.msk.f32.mxu0 %vm354_vm0, %v325_v15 }
  0x68   : > { %2105 = vmatmul.mubr.msk.f32.gmra.mrb[12].mxu0 %vm354_vm0, %v326_v16 }
  0x69   : > { %2107 = vmatprep.mubr.msk.f32.mxu0 %vm354_vm0, %v327_v17 }
  0x6c   : > { %2108 = vmatmul.mubr.msk.f32.gmra.mrb[14].mxu0 %vm354_vm0, %v328_v18 }
  0x6d   : > { %2110 = vmatprep.mubr.msk.f32.mxu0 %vm354_vm0, %v329_v19 }
  0x70   : > { %2111 = vmatmul.mubr.msk.f32.gmra.mrb[16].mxu0 %vm354_vm0, %v330_v20 }
  0x71   : > { %2113 = vmatprep.mubr.msk.f32.mxu0 %vm354_vm0, %v343_v21 }
  0x74   : > { %2114 = vmatmul.mubr.msk.f32.gmra.mrb[18].mxu0 %vm354_vm0, %v344_v22 }
 0x123   : > { %v2088_v24 = vpop.f32.mrb[0].mxu0 }
 0x124   : > { %v487_v25 = vadd.f32 %v2088_v24, %v2744_v23  ;;  %v481_v26 = vpop.f32.mrb[1].mxu0 }
 0x125   : > { %v482_v28 = vadd.f32 %v2744_v23, %v481_v26 }
 0x126   : > { %v581_v29 = vmax.f32 %v487_v25, 0.0 }
 0x127   : > { %v580_v30 = vmax.f32 %v482_v28, 0.0  ;;  %v2091_v31 = vpop.f32.mrb[2].mxu0 }
 0x128   : > { %v608_v32 = vmul.f32 %v606_v27, %v581_v29  ;;  %v497_v33 = vadd.f32 %v2091_v31, %v2744_v23  ;;  %v491_v34 = vpop.f32.mrb[3].mxu0 }
 0x129   : > { %v607_v35 = vmul.f32 %v606_v27, %v580_v30  ;;  %v492_v36 = vadd.f32 %v2744_v23, %v491_v34 }
 0x12a   : > { %v634_v37 = vrot.slane %v608_v32, 7  ;;  %v583_v38 = vmax.f32 %v497_v33, 0.0 }
 0x12b   : > { %v633_v39 = vrot.slane %v607_v35, 7  ;;  %v582_v40 = vmax.f32 %v492_v36, 0.0  ;;  %v2094_v41 = vpop.f32.mrb[4].mxu0 }
 0x12c   : > { %v637_v42 = vrot.slane %v583_v38, 7  ;;  %v501_v43 = vpop.f32.mrb[5].mxu0  ;;  %v507_v47 = vadd.f32 %v2094_v41, %v2744_v23  ;;  %v701_v50 = vsel %vm632_vm1, %v634_v37, 0.0 }
 0x12d   : > { %v2751_v44 = vsel %vm632_vm1, %v633_v39, %v634_v37  ;;  %v2754_v45 = vsel %vm632_vm1, 0.0, %v633_v39  ;;  %v636_v46 = vrot.slane %v582_v40, 7  ;;  %v502_v58 = vadd.f32 %v2744_v23, %v501_v43 }
 0x12e   : > { %v728_v48 = vrot.slane %v2754_v45, 1  ;;  %v729_v49 = vrot.slane %v2751_v44, 1  ;;  %v817_v53 = vrot.slane %v2754_v45, 2  ;;  %v818_v55 = vrot.slane %v2751_v44, 2 }
 0x12f   : > { %v2761_v51 = vsel %vm632_vm1, 0.0, %v636_v46  ;;  %v2764_v52 = vsel %vm632_vm1, %v636_v46, %v637_v42  ;;  %v2097_v54 = vpop.f32.mrb[6].mxu0  ;;  %v585_v57 = vmax.f32 %v507_v47, 0.0  ;;  %v731_v60 = vrot.slane %v701_v50, 1 }
 0x130   : > { %906 = vrot.lane.b32.xlu0 %v2761_v51, %s2480_s21  ;;  %908 = vrot.lane.b32.xlu1 %v2764_v52, %s2480_s21  ;;  %v511_v56 = vpop.f32.mrb[7].mxu0  ;;  %v730_v59 = vsel %vm727_vm2, %v728_v48, %v729_v49  ;;  %v819_v61 = vsel %vm816_vm3, %v817_v53, %v818_v55  ;;  %v820_v62 = vrot.slane %v701_v50, 2  ;;  %v584_v0 = vmax.f32 %v502_v58, 0.0 }
 0x131   : > { %v2775_v63 = vrot.slane %v585_v57, 7  ;;  %v517_v2 = vadd.f32 %v2097_v54, %v2744_v23  ;;  %v702_v4 = vsel %vm632_vm1, %v637_v42, 0.0  ;;  %v512_v6 = vadd.f32 %v2744_v23, %v511_v56  ;;  %v1352_v56 = vld [vmem:[%s3578_s3] sm:$0xff]  ;;  %v1353_v57 = vld [vmem:[%s3578_s3 + $0x8] sm:$0xff] }
 0x132   : > { %v639_v5 = vrot.slane %v584_v0, 7  ;;  %v732_v8 = vsel %vm727_vm2, %v729_v49, %v731_v60  ;;  %v733_v9 = vrot.slane %v2761_v51, 1  ;;  %v821_v12 = vsel %vm816_vm3, %v818_v55, %v820_v62  ;;  %v1355_v62 = vld [vmem:[%s3578_s3 + $0x18] sm:$0xff] }
 0x133   : > { %v2100_v1 = vpop.f32.mrb[8].mxu0  ;;  %v587_v10 = vmax.f32 %v517_v2, 0.0  ;;  %v734_v13 = vrot.slane %v2764_v52, 1  ;;  %v586_v15 = vmax.f32 %v512_v6, 0.0  ;;  %v736_v21 = vrot.slane %v702_v4, 1 }
 0x134   : > { %768 = vrot.lane.b32.xlu0 %v730_v59, %s3591_s7  ;;  %857 = vrot.lane.b32.xlu1 %v819_v61, %s2482_s16  ;;  %v521_v3 = vpop.f32.mrb[9].mxu0  ;;  %v527_v7 = vadd.f32 %v2100_v1, %v2744_v23  ;;  %v2790_v14 = vsel %vm632_vm1, %v639_v5, %v2775_v63  ;;  %v822_v25 = vrot.slane %v2761_v51, 2  ;;  %v823_v26 = vrot.slane %v2764_v52, 2  ;;  %v1354_v61 = vld [vmem:[%s3578_s3 + $0x10] sm:$0xff] }
 0x135   : > { %v522_v11 = vadd.f32 %v2744_v23, %v521_v3  ;;  %v2794_v19 = vrot.slane %v587_v10, 7  ;;  %v2796_v20 = vrot.slane %v586_v15, 7  ;;  %v735_v24 = vsel %vm727_vm2, %v733_v9, %v734_v13  ;;  %v1356_v3 = vld [vmem:[%s3578_s3 + $0x20] sm:$0xf] }
 0x136   : > { %v589_v17 = vmax.f32 %v527_v7, 0.0  ;;  %v824_v31 = vsel %vm816_vm3, %v822_v25, %v823_v26  ;;  %v737_v32 = vsel %vm727_vm2, %v734_v13, %v736_v21  ;;  %v825_v43 = vrot.slane %v702_v4, 2 }
 0x137   : > { %v2103_v16 = vpop.f32.mrb[10].mxu0  ;;  %v588_v22 = vmax.f32 %v522_v11, 0.0  ;;  %v2804_v27 = vsel %vm632_vm1, %v2796_v20, %v2794_v19  ;;  %v2834_v49 = vsel %vm632_vm1, 0.0, %v639_v5  ;;  %v2180_v58 = vpack.c.bf16 %v1353_v57, %v1352_v56 }
 0x138   : > { %770 = vrot.lane.b32.xlu0 %v732_v8, %s3591_s7  ;;  %859 = vrot.lane.b32.xlu1 %v821_v12, %s2482_s16  ;;  %v531_v18 = vpop.f32.mrb[11].mxu0  ;;  %v2808_v28 = vrot.slane %v589_v17, 7  ;;  %v537_v30 = vadd.f32 %v2103_v16, %v2744_v23  ;;  %v826_v54 = vsel %vm816_vm3, %v823_v26, %v825_v43  ;;  %v738_v59 = vrot.slane %v2834_v49, 1 }
 0x139   : > { %v2810_v29 = vrot.slane %v588_v22, 7  ;;  %v532_v33 = vadd.f32 %v2744_v23, %v531_v18  ;;  %v739_v60 = vrot.slane %v2790_v14, 1  ;;  %2181 = vmatprep.subr.bf16.mxu0 %v2180_v58  ;;  %v2184_v0 = vpack.c.bf16 %v1355_v62, %v1354_v61  ;;  %2188 = vmatprep.subr.bf16.mxu1 %v2180_v58 }
 0x13a   : > { %v591_v36 = vmax.f32 %v537_v30, 0.0  ;;  %2183 = vmatpush3.bf16.msra.mxu0 %v2180_v58  ;;  %2191 = vmatpush3.bf16.msra.mxu1 %v2180_v58  ;;  %v703_v2 = vsel %vm632_vm1, %v2775_v63, 0.0  ;;  %v827_v5 = vrot.slane %v2834_v49, 2  ;;  %v828_v6 = vrot.slane %v2790_v14, 2 }
 0x13b   : > { %v2106_v34 = vpop.f32.mrb[12].mxu0  ;;  %v2821_v35 = vsel %vm632_vm1, %v2810_v29, %v2808_v28  ;;  %v590_v40 = vmax.f32 %v532_v33, 0.0  ;;  %v740_v1 = vsel %vm727_vm2, %v738_v59, %v739_v60  ;;  %2185 = vmatprep.subr.bf16.mxu0 %v2184_v0  ;;  %2189 = vmatprep.subr.bf16.mxu1 %v2184_v0  ;;  %v741_v4 = vrot.slane %v703_v2, 1 }
 0x13c   : > { %772 = vrot.lane.b32.xlu1 %v735_v24, %s3591_s7  ;;  %960 = vrot.lane.b32.xlu0 %v735_v24, %s2483_s10  ;;  %v547_v37 = vadd.f32 %v2106_v34, %v2744_v23  ;;  %v541_v38 = vpop.f32.mrb[13].mxu0  ;;  %v2824_v39 = vrot.slane %v591_v36, 7  ;;  %v829_v63 = vsel %vm816_vm3, %v827_v5, %v828_v6  ;;  %v830_v8 = vrot.slane %v703_v2, 2 }
 0x13d   : > { %v542_v42 = vadd.f32 %v2744_v23, %v541_v38  ;;  %v2829_v46 = vrot.slane %v590_v40, 7  ;;  %v742_v7 = vsel %vm727_vm2, %v739_v60, %v741_v4  ;;  %v2904_v18 = vsel %vm632_vm1, 0.0, %v2796_v20 }
 0x13e   : > { %v593_v41 = vmax.f32 %v547_v37, 0.0  ;;  %2187 = vmatpush3.bf16.msra.mxu0 %v2184_v0  ;;  %2192 = vmatpush3.bf16.msra.mxu1 %v2184_v0  ;;  %v831_v9 = vsel %vm816_vm3, %v828_v6, %v830_v8  ;;  %v743_v24 = vrot.slane %v2904_v18, 1  ;;  %v744_v25 = vrot.slane %v2804_v27, 1 }
 0x13f   : > { %v592_v48 = vmax.f32 %v542_v42, 0.0  ;;  %v2839_v50 = vsel %vm632_vm1, %v2829_v46, %v2824_v39  ;;  %2124 = vmatprep.subr.msk.mxu0 %vm1413_vm4, %v1356_v3  ;;  %2190 = vmatprep.subr.msk.mxu1 %vm1413_vm4, %v1356_v3  ;;  %v2109_v10 = vpop.f32.mrb[14].mxu0  ;;  %v704_v26 = vsel %vm632_vm1, %v2794_v19, 0.0  ;;  %v705_v8 = vsel %vm632_vm1, %v2808_v28, 0.0 }
 0x140   : > { %1013 = vrot.lane.b32.xlu1 %v824_v31, %s3589_s19  ;;  %962 = vrot.lane.b32.xlu0 %v737_v32, %s2483_s10  ;;  %v2831_v47 = vrot.slane %v593_v41, 7  ;;  %v557_v11 = vadd.f32 %v2109_v10, %v2744_v23  ;;  %v551_v12 = vpop.f32.mrb[15].mxu0  ;;  %v745_v20 = vsel %vm727_vm2, %v743_v24, %v744_v25  ;;  %v746_v30 = vrot.slane %v704_v26, 1 }
 0x141   : > { %v2841_v53 = vrot.slane %v592_v48, 7  ;;  %v552_v13 = vadd.f32 %v2744_v23, %v551_v12  ;;  %v835_v19 = vrot.slane %v704_v26, 2  ;;  %v840_v28 = vrot.slane %v705_v8, 2 }
 0x142   : > { %2125 = vmatpush3.msk.msra.mxu0 %vm1413_vm4, %v1356_v3  ;;  %2193 = vmatpush3.msk.msra.mxu1 %vm1413_vm4, %v1356_v3  ;;  %v595_v15 = vmax.f32 %v557_v11, 0.0  ;;  %v747_v34 = vsel %vm727_vm2, %v744_v25, %v746_v30  ;;  %v838_v11 = vrot.slane %v2821_v35, 2 }
 0x143   : > { %v2850_v55 = vsel %vm632_vm1, %v2841_v53, %v2831_v47  ;;  %v594_v16 = vmax.f32 %v552_v13, 0.0  ;;  %v2112_v37 = vpop.f32.mrb[16].mxu0 }
 0x144   : > { %861 = vrot.lane.b32.xlu1 %v824_v31, %s2482_s16  ;;  %774 = vrot.lane.b32.xlu0 %v737_v32, %s3591_s7  ;;  %v2900_v17 = vrot.slane %v595_v15, 7  ;;  %v832_v31 = vrot.slane %v2904_v18, 2  ;;  %v833_v32 = vrot.slane %v2804_v27, 2  ;;  %v567_v38 = vadd.f32 %v2112_v37, %v2744_v23  ;;  %v561_v40 = vpop.f32.mrb[17].mxu0  ;;  %s604_s7 = scalar_select %p603_p4, 1, 0 }
 0x145   : > { %v2906_v21 = vrot.slane %v594_v16, 7  ;;  %v562_v41 = vadd.f32 %v2744_v23, %v561_v40  ;;  %v841_v30 = vsel %vm816_vm3, %v838_v11, %v840_v28 }
 0x146   : > { %v834_v33 = vsel %vm816_vm3, %v832_v31, %v833_v32  ;;  %v836_v36 = vsel %vm816_vm3, %v833_v32, %v835_v19  ;;  %v597_v42 = vmax.f32 %v567_v38, 0.0  ;;  %v3009_v38 = vsel %vm632_vm1, 0.0, %v2829_v46 }
 0x147   : > { %v2911_v22 = vsel %vm632_vm1, %v2906_v21, %v2900_v17  ;;  %v596_v43 = vmax.f32 %v562_v41, 0.0  ;;  %v2115_v15 = vpop.f32.mrb[18].mxu0 }
 0x148   : > { %1062 = vrot.lane.b32.xlu1 %v2834_v49, %s2485_s13  ;;  %1015 = vrot.lane.b32.xlu0 %v826_v54, %s3589_s19  ;;  %v658_v48 = vrot.slane %v597_v42, 7  ;;  %s605_s19 = scvt.s32.f32 %s604_s7  ;;  %v577_v16 = vadd.f32 %v2115_v15, %v2744_v23  ;;  %v571_v24 = vpop.f32.mrb[19].mxu0 }
 0x149   : > { %v657_v56 = vrot.slane %v596_v43, 7 }
 0x14a   : > { %v709_v57 = vsel %vm632_vm1, %v658_v48, 0.0  ;;  %v609_v25 = vstv %s605_s19  ;;  %v599_v26 = vmax.f32 %v577_v16, 0.0  ;;  %v842_v16 = vrot.slane %v3009_v38, 2  ;;  %s2021_s19 = sshll.u32 %s2459_s30, 4 }
 0x14b   : > { %v2951_v58 = vsel %vm632_vm1, %v657_v56, %v658_v48  ;;  %v2954_v59 = vsel %vm632_vm1, 0.0, %v657_v56  ;;  %v958_v60 = vrot.slane %v709_v57, 1  ;;  %v1011_v61 = vrot.slane %v709_v57, 2 }
 0x14c   : > { %910 = vrot.lane.b32.xlu1 %v2834_v49, %s2480_s21  ;;  %863 = vrot.lane.b32.xlu0 %v826_v54, %s2482_s16  ;;  %v2947_v54 = vsel %vm632_vm1, 0.0, %v2810_v29  ;;  %v955_v62 = vrot.slane %v2954_v59, 1  ;;  %v1008_v29 = vrot.slane %v2954_v59, 2  ;;  %v956_v2 = vrot.slane %v2951_v58, 1 }
 0x14d   : > { %v748_v0 = vrot.slane %v2947_v54, 1  ;;  %v1009_v3 = vrot.slane %v2951_v58, 2  ;;  %v837_v10 = vrot.slane %v2947_v54, 2  ;;  %v611_v32 = vmul.f32 %v609_v25, %v599_v26 }
 0x14e   : > { %v2969_v4 = vsel %vm727_vm2, %v955_v62, %v956_v2  ;;  %v2975_v6 = vsel %vm727_vm2, %v956_v2, %v958_v60 }
 0x14f   : > { %v2972_v5 = vsel %vm816_vm3, %v1008_v29, %v1009_v3  ;;  %v839_v12 = vsel %vm816_vm3, %v837_v10, %v838_v11 }
 0x150   : > { %1116 = vrot.lane.b32.xlu1 %v740_v1, %s2486_s17  ;;  %1064 = vrot.lane.b32.xlu0 %v2790_v14, %s2485_s13 }
 0x154   : > { %964 = vrot.lane.b32.xlu1 %v740_v1, %s2483_s10  ;;  %912 = vrot.lane.b32.xlu0 %v2790_v14, %s2480_s21 }
 0x158   : > { %1169 = vrot.lane.b32.xlu1 %v829_v63, %s2487_s20  ;;  %1118 = vrot.lane.b32.xlu0 %v742_v7, %s2486_s17 }
 0x15c   : > { %966 = vrot.lane.b32.xlu1 %v742_v7, %s2483_s10  ;;  %776 = vrot.lane.b32.xlu0 %v740_v1, %s3604_s22  ;;  %v749_v1 = vrot.slane %v2821_v35, 1 }
 0x160   : > { %1171 = vrot.lane.b32.xlu1 %v831_v9, %s2487_s20  ;;  %1017 = vrot.lane.b32.xlu0 %v829_v63, %s3605_s15 }
 0x164   : > { %865 = vrot.lane.b32.xlu1 %v829_v63, %s2482_s16  ;;  %778 = vrot.lane.b32.xlu0 %v742_v7, %s3604_s22  ;;  %v2978_v63 = vsel %vm816_vm3, %v1009_v3, %v1011_v61  ;;  %v750_v7 = vsel %vm727_vm2, %v748_v0, %v749_v1 }
 0x168   : > { %1066 = vrot.lane.b32.xlu1 %v2904_v18, %s2485_s13  ;;  %1019 = vrot.lane.b32.xlu0 %v831_v9, %s3605_s15 }
 0x16c   : > { %914 = vrot.lane.b32.xlu1 %v2904_v18, %s2480_s21  ;;  %867 = vrot.lane.b32.xlu0 %v831_v9, %s2482_s16  ;;  %v751_v9 = vrot.slane %v705_v8, 1  ;;  %v754_v8 = vrot.slane %v2839_v50, 1 }
 0x16e   : > { %v752_v13 = vsel %vm727_vm2, %v749_v1, %v751_v9 }
 0x170   : > { %1120 = vrot.lane.b32.xlu1 %v745_v20, %s2486_s17  ;;  %1068 = vrot.lane.b32.xlu0 %v2804_v27, %s2485_s13 }
 0x174   : > { %968 = vrot.lane.b32.xlu1 %v745_v20, %s2483_s10  ;;  %916 = vrot.lane.b32.xlu0 %v2804_v27, %s2480_s21 }
 0x178   : > { %1173 = vrot.lane.b32.xlu1 %v834_v33, %s2487_s20  ;;  %1122 = vrot.lane.b32.xlu0 %v747_v34, %s2486_s17 }
 0x17c   : > { %970 = vrot.lane.b32.xlu1 %v747_v34, %s2483_s10  ;;  %780 = vrot.lane.b32.xlu0 %v745_v20, %s3604_s22  ;;  %v572_v20 = vadd.f32 %v2744_v23, %v571_v24  ;;  %v843_v24 = vrot.slane %v2839_v50, 2 }
 0x17e   : > { %v598_v31 = vmax.f32 %v572_v20, 0.0  ;;  %v844_v20 = vsel %vm816_vm3, %v842_v16, %v843_v24 }
 0x180   : > { %1175 = vrot.lane.b32.xlu1 %v836_v36, %s2487_s20  ;;  %1021 = vrot.lane.b32.xlu0 %v834_v33, %s3605_s15 }
 0x184   : > { %869 = vrot.lane.b32.xlu1 %v834_v33, %s2482_s16  ;;  %782 = vrot.lane.b32.xlu0 %v747_v34, %s3604_s22  ;;  %v610_v33 = vmul.f32 %v609_v25, %v598_v31 }
 0x186   : > { %v660_v37 = vrot.slane %v610_v33, 7 }
 0x188   : > { %1070 = vrot.lane.b32.xlu1 %v2947_v54, %s2485_s13  ;;  %1023 = vrot.lane.b32.xlu0 %v836_v36, %s3605_s15  ;;  %v3018_v43 = vsel %vm632_vm1, 0.0, %v660_v37 }
 0x189   : > { %v1111_v60 = vrot.slane %v3018_v43, 1  ;;  %v1164_v61 = vrot.slane %v3018_v43, 2 }
 0x18c   : > { %918 = vrot.lane.b32.xlu1 %v2947_v54, %s2480_s21  ;;  %871 = vrot.lane.b32.xlu0 %v836_v36, %s2482_s16  ;;  %v661_v36 = vrot.slane %v611_v32, 7 }
 0x18e   : > { %v710_v23 = vsel %vm632_vm1, %v661_v36, 0.0  ;;  %v3015_v42 = vsel %vm632_vm1, %v660_v37, %v661_v36 }
 0x18f   : > { %v1114_v40 = vrot.slane %v710_v23, 1  ;;  %v1167_v41 = vrot.slane %v710_v23, 2  ;;  %v1112_v57 = vrot.slane %v3015_v42, 1  ;;  %v1165_v46 = vrot.slane %v3015_v42, 2 }
 0x190   : > { %1124 = vrot.lane.b32.xlu1 %v750_v7, %s2486_s17  ;;  %1072 = vrot.lane.b32.xlu0 %v2821_v35, %s2485_s13 }
 0x191   : > { %v3028_v62 = vsel %vm727_vm2, %v1112_v57, %v1114_v40  ;;  %v3031_v29 = vsel %vm727_vm2, %v1111_v60, %v1112_v57  ;;  %v3034_v0 = vsel %vm816_vm3, %v1165_v46, %v1167_v41  ;;  %v3037_v1 = vsel %vm816_vm3, %v1164_v61, %v1165_v46 }
 0x192   : > { %v3081_v46 = vsel %vm632_vm1, 0.0, %v2841_v53 }
 0x194   : > { %972 = vrot.lane.b32.xlu1 %v750_v7, %s2483_s10  ;;  %920 = vrot.lane.b32.xlu0 %v2821_v35, %s2480_s21 }
 0x198   : > { %1177 = vrot.lane.b32.xlu1 %v839_v12, %s2487_s20  ;;  %1126 = vrot.lane.b32.xlu0 %v752_v13, %s2486_s17 }
 0x19c   : > { %974 = vrot.lane.b32.xlu1 %v752_v13, %s2483_s10  ;;  %784 = vrot.lane.b32.xlu0 %v750_v7, %s3604_s22  ;;  %v753_v7 = vrot.slane %v3009_v38, 1 }
 0x19e   : > { %v755_v11 = vsel %vm727_vm2, %v753_v7, %v754_v8 }
 0x1a0   : > { %1179 = vrot.lane.b32.xlu1 %v841_v30, %s2487_s20  ;;  %1025 = vrot.lane.b32.xlu0 %v839_v12, %s3605_s15 }
 0x1a2   : > { %v3003_v34 = vpop.permute.xlu0 %906  ;;  %v3005_v19 = vpop.permute.xlu1 %908 }
 0x1a4   : > { %873 = vrot.lane.b32.xlu1 %v839_v12, %s2482_s16  ;;  %786 = vrot.lane.b32.xlu0 %v752_v13, %s3604_s22  ;;  %v706_v12 = vsel %vm632_vm1, %v2824_v39, 0.0 }
 0x1a5   : > { %v756_v15 = vrot.slane %v706_v12, 1  ;;  %v845_v32 = vrot.slane %v706_v12, 2 }
 0x1a6   : > { %v769_v48 = vpop.permute.xlu0 %768  ;;  %v858_v56 = vpop.permute.xlu1 %857 }
 0x1a7   : > { %v757_v26 = vsel %vm727_vm2, %v754_v8, %v756_v15  ;;  %v846_v37 = vsel %vm816_vm3, %v843_v24, %v845_v32  ;;  %v1218_v23 = vsel %vm1217_vm5, %v2754_v45, %v769_v48 }
 0x1a8   : > { %1074 = vrot.lane.b32.xlu1 %v3009_v38, %s2485_s13  ;;  %1027 = vrot.lane.b32.xlu0 %v841_v30, %s3605_s15  ;;  %v1235_v57 = vsel %vm1234_vm6, %v1218_v23, %v858_v56 }
 0x1a9   : > { %v1252_v45 = vsel %vm1251_vm7, %v1235_v57, %v3003_v34 }
 0x1aa   : > { %v771_v2 = vpop.permute.xlu0 %770  ;;  %v860_v3 = vpop.permute.xlu1 %859 }
 0x1ab   : > { %v1219_v61 = vsel %vm1217_vm5, %v2751_v44, %v771_v2  ;;  %v758_v44 = vrot.slane %v3081_v46, 1  ;;  %v759_v2 = vrot.slane %v2850_v55, 1 }
 0x1ac   : > { %922 = vrot.lane.b32.xlu1 %v3009_v38, %s2480_s21  ;;  %875 = vrot.lane.b32.xlu0 %v841_v30, %s2482_s16 }
 0x1ad   : > { %v760_v24 = vsel %vm727_vm2, %v758_v44, %v759_v2 }
 0x1ae   : > { %v3044_v9 = vpop.permute.xlu1 %772  ;;  %v961_v10 = vpop.permute.xlu0 %960 }
 0x1af   : > { %v1268_v56 = vsel %vm354_vm0, %v1252_v45, %v961_v10  ;;  %v1236_v10 = vsel %vm1234_vm6, %v1219_v61, %v860_v3 }
 0x1b0   : > { %1128 = vrot.lane.b32.xlu1 %v755_v11, %s2486_s17  ;;  %1076 = vrot.lane.b32.xlu0 %v2839_v50, %s2485_s13 }
 0x1b2   : > { %v1014_v13 = vpop.permute.xlu1 %1013  ;;  %v963_v28 = vpop.permute.xlu0 %962 }
 0x1b3   : > { %v1285_v7 = vsel %vm1284_vm8, %v1268_v56, %v1014_v13  ;;  %v1253_v13 = vsel %vm1251_vm7, %v1236_v10, %v3005_v19 }
 0x1b4   : > { %976 = vrot.lane.b32.xlu1 %v755_v11, %s2483_s10  ;;  %924 = vrot.lane.b32.xlu0 %v2839_v50, %s2480_s21  ;;  %v1269_v3 = vsel %vm354_vm0, %v1253_v13, %v963_v28 }
 0x1b6   : > { %v3057_v25 = vpop.permute.xlu1 %861  ;;  %v3059_v39 = vpop.permute.xlu0 %774 }
 0x1b8   : > { %1181 = vrot.lane.b32.xlu1 %v844_v20, %s2487_s20  ;;  %1130 = vrot.lane.b32.xlu0 %v757_v26, %s2486_s17 }
 0x1ba   : > { %v1063_v30 = vpop.permute.xlu1 %1062  ;;  %v1016_v31 = vpop.permute.xlu0 %1015 }
 0x1bb   : > { %v1302_v53 = vsel %vm1301_vm9, %v1285_v7, %v1063_v30 }
 0x1bc   : > { %978 = vrot.lane.b32.xlu1 %v757_v26, %s2483_s10  ;;  %788 = vrot.lane.b32.xlu0 %v755_v11, %s3604_s22 }
 0x1be   : > { %v3067_v33 = vpop.permute.xlu1 %910  ;;  %v3069_v36 = vpop.permute.xlu0 %863 }
 0x1c0   : > { %1183 = vrot.lane.b32.xlu1 %v846_v37, %s2487_s20  ;;  %1029 = vrot.lane.b32.xlu0 %v844_v20, %s3605_s15 }
 0x1c2   : > { %v1117_v40 = vpop.permute.xlu1 %1116  ;;  %v1065_v41 = vpop.permute.xlu0 %1064 }
 0x1c3   : > { %v1319_v34 = vsel %vm1318_vm10, %v1302_v53, %v1117_v40  ;;  %v847_v40 = vrot.slane %v3081_v46, 2 }
 0x1c4   : > { %877 = vrot.lane.b32.xlu1 %v844_v20, %s2482_s16  ;;  %790 = vrot.lane.b32.xlu0 %v757_v26, %s3604_s22  ;;  %v1286_v20 = vsel %vm1284_vm8, %v1269_v3, %v1016_v31  ;;  %v707_v26 = vsel %vm632_vm1, %v2831_v47, 0.0  ;;  %v848_v31 = vrot.slane %v2850_v55, 2 }
 0x1c5   : > { %v1303_v19 = vsel %vm1301_vm9, %v1286_v20, %v1065_v41  ;;  %v761_v23 = vrot.slane %v707_v26, 1  ;;  %v850_v7 = vrot.slane %v707_v26, 2 }
 0x1c6   : > { %v3085_v48 = vpop.permute.xlu1 %964  ;;  %v3087_v60 = vpop.permute.xlu0 %912  ;;  %v849_v57 = vsel %vm816_vm3, %v847_v40, %v848_v31 }
 0x1c7   : > { %v762_v45 = vsel %vm727_vm2, %v759_v2, %v761_v23  ;;  %v3155_v2 = vsel %vm632_vm1, 0.0, %v2906_v21 }
 0x1c8   : > { %1078 = vrot.lane.b32.xlu1 %v3081_v46, %s2485_s13  ;;  %1031 = vrot.lane.b32.xlu0 %v846_v37, %s3605_s15 }
 0x1ca   : > { %v1170_v8 = vpop.permute.xlu1 %1169  ;;  %v1119_v11 = vpop.permute.xlu0 %1118 }
 0x1cb   : > { %v1336_v12 = vsel %vm1335_vm11, %v1319_v34, %v1170_v8  ;;  %v1320_v30 = vsel %vm1318_vm10, %v1303_v19, %v1119_v11  ;;  %v851_v8 = vsel %vm816_vm3, %v848_v31, %v850_v7  ;;  %v763_v19 = vrot.slane %v3155_v2, 1 }
 0x1cc   : > { %926 = vrot.lane.b32.xlu1 %v3081_v46, %s2480_s21  ;;  %879 = vrot.lane.b32.xlu0 %v846_v37, %s2482_s16  ;;  %v708_v31 = vsel %vm632_vm1, %v2900_v17, 0.0  ;;  %v852_v7 = vrot.slane %v3155_v2, 2 }
 0x1cd   : > { %2126 = vmatprep.mubr.msk.f32.mxu0 %vm1364_vm12, %v1336_v12  ;;  %v1220_v12 = vsel %vm1217_vm5, %v2761_v51, %v3044_v9 }
 0x1ce   : > { %v3108_v15 = vpop.permute.xlu1 %966  ;;  %v3110_v16 = vpop.permute.xlu0 %776  ;;  %v1237_v44 = vsel %vm1234_vm6, %v1220_v12, %v3057_v25 }
 0x1cf   : > { %v1254_v13 = vsel %vm1251_vm7, %v1237_v44, %v3067_v33 }
 0x1d0   : > { %1132 = vrot.lane.b32.xlu1 %v760_v24, %s2486_s17  ;;  %1080 = vrot.lane.b32.xlu0 %v2850_v55, %s2485_s13  ;;  %v1270_v51 = vsel %vm354_vm0, %v1254_v13, %v3085_v48  ;;  %v1221_v48 = vsel %vm1217_vm5, %v2764_v52, %v3059_v39  ;;  %v855_v13 = vrot.slane %v708_v31, 2 }
 0x1d2   : > { %v1172_v32 = vpop.permute.xlu1 %1171  ;;  %v1018_v37 = vpop.permute.xlu0 %1017 }
 0x1d3   : > { %v1337_v28 = vsel %vm1335_vm11, %v1320_v30, %v1172_v32  ;;  %v1287_v9 = vsel %vm1284_vm8, %v1270_v51, %v1018_v37  ;;  %v764_v30 = vrot.slane %v2911_v22, 1  ;;  %v1238_v32 = vsel %vm1234_vm6, %v1221_v48, %v3069_v36 }
 0x1d4   : > { %980 = vrot.lane.b32.xlu1 %v760_v24, %s2483_s10  ;;  %928 = vrot.lane.b32.xlu0 %v2850_v55, %s2480_s21  ;;  %v1255_v37 = vsel %vm1251_vm7, %v1238_v32, %v3087_v60 }
 0x1d5   : > { %2127 = vmatmul.mubr.msk.f32.vlgmr.msra.gmra.mrb[20].mxu0 %vm1364_vm12, %v1337_v28  ;;  %v1271_v40 = vsel %vm354_vm0, %v1255_v37, %v3108_v15  ;;  %v765_v52 = vsel %vm727_vm2, %v763_v19, %v764_v30 }
 0x1d6   : > { %v3129_v47 = vpop.permute.xlu1 %865  ;;  %v3131_v41 = vpop.permute.xlu0 %778 }
 0x1d8   : > { %1185 = vrot.lane.b32.xlu1 %v849_v57, %s2487_s20  ;;  %1134 = vrot.lane.b32.xlu0 %v762_v45, %s2486_s17 }
 0x1da   : > { %v1067_v56 = vpop.permute.xlu1 %1066  ;;  %v1020_v61 = vpop.permute.xlu0 %1019 }
 0x1db   : > { %v1304_v21 = vsel %vm1301_vm9, %v1287_v9, %v1067_v56  ;;  %v1288_v39 = vsel %vm1284_vm8, %v1271_v40, %v1020_v61  ;;  %v766_v56 = vrot.slane %v708_v31, 1  ;;  %v853_v61 = vrot.slane %v2911_v22, 2 }
 0x1dc   : > { %982 = vrot.lane.b32.xlu1 %v762_v45, %s2483_s10  ;;  %792 = vrot.lane.b32.xlu0 %v760_v24, %s3604_s22 }
 0x1de   : > { %v3139_v53 = vpop.permute.xlu1 %914  ;;  %v3141_v34 = vpop.permute.xlu0 %867 }
 0x1e0   : > { %1187 = vrot.lane.b32.xlu1 %v851_v8, %s2487_s20  ;;  %1033 = vrot.lane.b32.xlu0 %v849_v57, %s3605_s15 }
 0x1e2   : > { %v1121_v11 = vpop.permute.xlu1 %1120  ;;  %v1069_v10 = vpop.permute.xlu0 %1068 }
 0x1e3   : > { %v1321_v25 = vsel %vm1318_vm10, %v1304_v21, %v1121_v11  ;;  %v1305_v36 = vsel %vm1301_vm9, %v1288_v39, %v1069_v10  ;;  %v854_v11 = vsel %vm816_vm3, %v852_v7, %v853_v61  ;;  %v767_v10 = vsel %vm727_vm2, %v764_v30, %v766_v56 }
 0x1e4   : > { %881 = vrot.lane.b32.xlu1 %v849_v57, %s2482_s16  ;;  %794 = vrot.lane.b32.xlu0 %v762_v45, %s3604_s22  ;;  %v856_v21 = vsel %vm816_vm3, %v853_v61, %v855_v13 }
 0x1e6   : > { %v3159_v3 = vpop.permute.xlu1 %968  ;;  %v3161_v24 = vpop.permute.xlu0 %916 }
 0x1e8   : > { %1082 = vrot.lane.b32.xlu1 %v3155_v2, %s2485_s13  ;;  %1035 = vrot.lane.b32.xlu0 %v851_v8, %s3605_s15 }
 0x1ea   : > { %v1174_v20 = vpop.permute.xlu1 %1173  ;;  %v1123_v33 = vpop.permute.xlu0 %1122 }
 0x1eb   : > { %v1338_v26 = vsel %vm1335_vm11, %v1321_v25, %v1174_v20  ;;  %v1322_v60 = vsel %vm1318_vm10, %v1305_v36, %v1123_v33  ;;  %v1222_v33 = vsel %vm1217_vm5, %v2834_v49, %v3110_v16 }
 0x1ec   : > { %930 = vrot.lane.b32.xlu1 %v3155_v2, %s2480_s21  ;;  %883 = vrot.lane.b32.xlu0 %v851_v8, %s2482_s16 }
 0x1ed   : > { %2129 = vmatprep.mubr.msk.f32.mxu0 %vm1364_vm12, %v1338_v26  ;;  %v1239_v26 = vsel %vm1234_vm6, %v1222_v33, %v3129_v47 }
 0x1ee   : > { %v971_v23 = vpop.permute.xlu1 %970  ;;  %v3185_v28 = vpop.permute.xlu0 %780  ;;  %v1256_v19 = vsel %vm1251_vm7, %v1239_v26, %v3139_v53 }
 0x1ef   : > { %v1272_v32 = vsel %vm354_vm0, %v1256_v19, %v3159_v3 }
 0x1f0   : > { %1136 = vrot.lane.b32.xlu1 %v765_v52, %s2486_s17  ;;  %1084 = vrot.lane.b32.xlu0 %v2911_v22, %s2485_s13 }
 0x1f2   : > { %v1176_v57 = vpop.permute.xlu1 %1175  ;;  %v1022_v45 = vpop.permute.xlu0 %1021 }
 0x1f3   : > { %v1339_v15 = vsel %vm1335_vm11, %v1322_v60, %v1176_v57  ;;  %v1289_v37 = vsel %vm1284_vm8, %v1272_v32, %v1022_v45 }
 0x1f4   : > { %984 = vrot.lane.b32.xlu1 %v765_v52, %s2483_s10  ;;  %932 = vrot.lane.b32.xlu0 %v2911_v22, %s2480_s21 }
 0x1f5   : > { %2130 = vmatmul.mubr.msk.f32.gmra.mrb[22].mxu0 %vm1364_vm12, %v1339_v15 }
 0x1f6   : > { %v3205_v17 = vpop.permute.xlu1 %869  ;;  %v3207_v8 = vpop.permute.xlu0 %782 }
 0x1f7   : > { %v1225_v13 = vsel %vm1217_vm5, %v2804_v27, %v3207_v8 }
 0x1f8   : > { %1189 = vrot.lane.b32.xlu1 %v854_v11, %s2487_s20  ;;  %1138 = vrot.lane.b32.xlu0 %v767_v10, %s2486_s17 }
 0x1fa   : > { %v1071_v12 = vpop.permute.xlu1 %1070  ;;  %v1024_v44 = vpop.permute.xlu0 %1023 }
 0x1fb   : > { %v1306_v49 = vsel %vm1301_vm9, %v1289_v37, %v1071_v12 }
 0x1fc   : > { %986 = vrot.lane.b32.xlu1 %v767_v10, %s2483_s10  ;;  %796 = vrot.lane.b32.xlu0 %v765_v52, %s3604_s22  ;;  %v1223_v52 = vsel %vm1217_vm5, %v2790_v14, %v3131_v41 }
 0x1fd   : > { %v1240_v3 = vsel %vm1234_vm6, %v1223_v52, %v3141_v34 }
 0x1fe   : > { %v919_v51 = vpop.permute.xlu1 %918  ;;  %v3215_v9 = vpop.permute.xlu0 %871  ;;  %v1257_v39 = vsel %vm1251_vm7, %v1240_v3, %v3161_v24 }
 0x1ff   : > { %v1273_v60 = vsel %vm354_vm0, %v1257_v39, %v971_v23 }
 0x200   : > { %1191 = vrot.lane.b32.xlu1 %v856_v21, %s2487_s20  ;;  %1037 = vrot.lane.b32.xlu0 %v854_v11, %s3605_s15  ;;  %v1290_v14 = vsel %vm1284_vm8, %v1273_v60, %v1024_v44 }
 0x202   : > { %v1125_v25 = vpop.permute.xlu1 %1124  ;;  %v1073_v20 = vpop.permute.xlu0 %1072 }
 0x203   : > { %v1323_v16 = vsel %vm1318_vm10, %v1306_v49, %v1125_v25 }
 0x204   : > { %885 = vrot.lane.b32.xlu1 %v854_v11, %s2482_s16  ;;  %798 = vrot.lane.b32.xlu0 %v767_v10, %s3604_s22  ;;  %v1224_v11 = vsel %vm1217_vm5, %v2904_v18, %v3185_v28 }
 0x206   : > { %v973_v30 = vpop.permute.xlu1 %972  ;;  %v3229_v48 = vpop.permute.xlu0 %920 }
 0x208   : > { %1086 = vrot.lane.b32.xlu1 %v2954_v59, %s2485_s13  ;;  %1039 = vrot.lane.b32.xlu0 %v856_v21, %s3605_s15 }
 0x20a   : > { %v1178_v47 = vpop.permute.xlu1 %1177  ;;  %v1127_v40 = vpop.permute.xlu0 %1126 }
 0x20b   : > { %v1340_v53 = vsel %vm1335_vm11, %v1323_v16, %v1178_v47 }
 0x20c   : > { %934 = vrot.lane.b32.xlu1 %v2954_v59, %s2480_s21  ;;  %887 = vrot.lane.b32.xlu0 %v856_v21, %s2482_s16  ;;  %v1307_v59 = vsel %vm1301_vm9, %v1290_v14, %v1073_v20 }
 0x20d   : > { %2132 = vmatprep.mubr.msk.f32.mxu0 %vm1364_vm12, %v1340_v53  ;;  %v1324_v41 = vsel %vm1318_vm10, %v1307_v59, %v1127_v40 }
 0x20e   : > { %v975_v31 = vpop.permute.xlu1 %974  ;;  %v3251_v36 = vpop.permute.xlu0 %784 }
 0x20f   : > { %v1226_v47 = vsel %vm1217_vm5, %v2947_v54, %v3251_v36 }
 0x210   : > { %1140 = vrot.lane.b32.xlu1 %v2969_v4, %s2486_s17  ;;  %1088 = vrot.lane.b32.xlu0 %v2951_v58, %s2485_s13 }
 0x212   : > { %v1180_v34 = vpop.permute.xlu1 %1179  ;;  %v1026_v57 = vpop.permute.xlu0 %1025 }
 0x213   : > { %v1341_v24 = vsel %vm1335_vm11, %v1324_v41, %v1180_v34 }
 0x214   : > { %988 = vrot.lane.b32.xlu1 %v2969_v4, %s2483_s10  ;;  %936 = vrot.lane.b32.xlu0 %v2951_v58, %s2480_s21  ;;  %s1844_s21 = sadd.s32 %s2021_s19, %s2015_s18  ;;  %s2488_s19 = smov [#allocation5]  }
 0x215   : > { %2133 = vmatmul.mubr.msk.f32.gmra.mrb[24].mxu0 %vm1364_vm12, %v1341_v24  ;;  %s2357_s18 = sshll.u32 %s2488_s19, 4  ;;  %s2358_s18 = int_to_ptr.vmem [resolvable:$false] %s2357_s18 }
 0x216   : > { %v874_v23 = vpop.permute.xlu1 %873  ;;  %v3267_v45 = vpop.permute.xlu0 %786 }
 0x217   : > { %v1243_v40 = vsel %vm1234_vm6, %v1226_v47, %v874_v23  ;;  %v1227_v54 = vsel %vm1217_vm5, %v2821_v35, %v3267_v45 }
 0x218   : > { %1193 = vrot.lane.b32.xlu1 %v2972_v5, %s2487_s20  ;;  %1142 = vrot.lane.b32.xlu0 %v2975_v6, %s2486_s17 }
 0x21a   : > { %v1075_v56 = vpop.permute.xlu1 %1074  ;;  %v1028_v15 = vpop.permute.xlu0 %1027 }
 0x21c   : > { %1041 = vrot.lane.b32.xlu1 %v2972_v5, %s3605_s15  ;;  %990 = vrot.lane.b32.xlu0 %v2975_v6, %s2483_s10  ;;  %v1241_v5 = vsel %vm1234_vm6, %v1224_v11, %v3205_v17 }
 0x21d   : > { %v1258_v6 = vsel %vm1251_vm7, %v1241_v5, %v919_v51 }
 0x21e   : > { %v923_v58 = vpop.permute.xlu1 %922  ;;  %v3277_v4 = vpop.permute.xlu0 %875 }
 0x21f   : > { %v1260_v53 = vsel %vm1251_vm7, %v1243_v40, %v923_v58  ;;  %v1244_v36 = vsel %vm1234_vm6, %v1227_v54, %v3277_v4 }
 0x220   : > { %1043 = vrot.lane.b32.xlu1 %v2978_v63, %s3605_s15  ;;  %1195 = vrot.lane.b32.xlu0 %v2978_v63, %s2487_s20  ;;  %v1274_v63 = vsel %vm354_vm0, %v1258_v6, %v973_v30 }
 0x221   : > { %v1291_v44 = vsel %vm1284_vm8, %v1274_v63, %v1026_v57 }
 0x222   : > { %v1129_v7 = vpop.permute.xlu1 %1128  ;;  %v1077_v61 = vpop.permute.xlu0 %1076  ;;  %v1308_v18 = vsel %vm1301_vm9, %v1291_v44, %v1075_v56 }
 0x224   : > { %1092 = vrot.lane.b32.xlu1 %v3015_v42, %s2485_s13  ;;  %1090 = vrot.lane.b32.xlu0 %v3018_v43, %s2485_s13  ;;  %v1325_v42 = vsel %vm1318_vm10, %v1308_v18, %v1129_v7  ;;  %s2016_s13 = sshll.u32 %s1844_s21, 7  ;;  %s2359_s21 = scalar_lea.vmem %s2358_s18, 4096 }
 0x226   : > { %v977_v10 = vpop.permute.xlu1 %976  ;;  %v925_v12 = vpop.permute.xlu0 %924 }
 0x227   : > { %v1276_v39 = vsel %vm354_vm0, %v1260_v53, %v977_v10  ;;  %v1261_v57 = vsel %vm1251_vm7, %v1244_v36, %v925_v12 }
 0x228   : > { %1146 = vrot.lane.b32.xlu1 %v3028_v62, %s2486_s17  ;;  %1144 = vrot.lane.b32.xlu0 %v3031_v29, %s2486_s17  ;;  %v1578_v62 = vld [vmem:[%s3580_s5] sm:$0xf]  ;;  %v1242_v29 = vsel %vm1234_vm6, %v1225_v13, %v3215_v9  ;;  %s308_s17 = sand.u32 1, %s2439_s25  }
 0x229   : > { %2150 = vmatprep.subr.msk.mxu1 %vm1413_vm4, %v1578_v62  ;;  %v1259_v27 = vsel %vm1251_vm7, %v1242_v29, %v3229_v48  ;;  %s1949_s15 = sshll.u32 %s308_s17, 7 }
 0x22a   : > { %v1182_v43 = vpop.permute.xlu1 %1181  ;;  %v1131_v28 = vpop.permute.xlu0 %1130  ;;  %s3439_s7 = scalar_lea.vmem [#allocation5], %s1949_s15  ;;  %s3513_s15 = scalar_lea.sflag [#allocation4], %s308_s17 }
 0x22b   : > { %v1342_v17 = vsel %vm1335_vm11, %v1325_v42, %v1182_v43  ;;  %s1847_s10 = sshll.u32 %s3439_s7, 4  ;;  %s3500_s10 = int_to_ptr.vmem [resolvable:$true] %s1847_s10 }
 0x22c   : > { %1199 = vrot.lane.b32.xlu1 %v3034_v0, %s2487_s20  ;;  %1197 = vrot.lane.b32.xlu0 %v3037_v1, %s2487_s20  ;;  %v1275_v0 = vsel %vm354_vm0, %v1259_v27, %v975_v31  ;;  %s3606_s20 = sld [smem:[#allocation12_spill]]  ;;  %p2360_p3 = scmp.lt.s32.totalorder %s3500_s10, %s2358_s18 }
 0x22d   : > { %2135 = vmatprep.mubr.msk.f32.mxu1 %vm1364_vm12, %v1342_v17  ;;  %v1292_v1 = vsel %vm1284_vm8, %v1275_v0, %v1028_v15 }
 0x22e   : > { %v979_v8 = vpop.permute.xlu1 %978  ;;  %v789_v51 = vpop.permute.xlu0 %788  ;;  %v1309_v21 = vsel %vm1301_vm9, %v1292_v1, %v1077_v61 }
 0x22f   : > { %v1326_v25 = vsel %vm1318_vm10, %v1309_v21, %v1131_v28  ;;  %v1277_v56 = vsel %vm354_vm0, %v1261_v57, %v979_v8  ;;  %v1228_v18 = vsel %vm1217_vm5, %v3009_v38, %v789_v51 }
 0x232   : > { %v1184_v20 = vpop.permute.xlu1 %1183  ;;  %v1030_v33 = vpop.permute.xlu0 %1029  ;;  %s3505_s22 = scalar_lea.hbm %s3606_s20, %s2016_s13 }
 0x233   : > { %v1343_v9 = vsel %vm1335_vm11, %v1326_v25, %v1184_v20  ;;  %v1293_v31 = vsel %vm1284_vm8, %v1276_v39, %v1030_v33 }
 0x234   : > { %2136 = vmatmul.mubr.msk.f32.vlgmr.msra.gmra.mrb[0].mxu1 %vm1364_vm12, %v1343_v9 }
 0x235   : > { %2151 = vmatpush3.msk.msra.mxu1 %vm1413_vm4, %v1578_v62 }
 0x236   : > { %v878_v26 = vpop.permute.xlu1 %877  ;;  %v791_v19 = vpop.permute.xlu0 %790 }
 0x237   : > { %v1245_v42 = vsel %vm1234_vm6, %v1228_v18, %v878_v26  ;;  %v1229_v38 = vsel %vm1217_vm5, %v2839_v50, %v791_v19 }
 0x23a   : > { %v1079_v30 = vpop.permute.xlu1 %1078  ;;  %v1032_v48 = vpop.permute.xlu0 %1031 }
 0x23b   : > { %v1310_v60 = vsel %vm1301_vm9, %v1293_v31, %v1079_v30  ;;  %v1294_v15 = vsel %vm1284_vm8, %v1277_v56, %v1032_v48 }
 0x23e   : > { %v927_v32 = vpop.permute.xlu1 %926  ;;  %v880_v37 = vpop.permute.xlu0 %879 }
 0x23f   : > { %v1262_v43 = vsel %vm1251_vm7, %v1245_v42, %v927_v32  ;;  %v1246_v51 = vsel %vm1234_vm6, %v1229_v38, %v880_v37 }
 0x242   : > { %v1133_v49 = vpop.permute.xlu1 %1132  ;;  %v1081_v16 = vpop.permute.xlu0 %1080 }
 0x243   : > { %v1327_v14 = vsel %vm1318_vm10, %v1310_v60, %v1133_v49  ;;  %v1311_v58 = vsel %vm1301_vm9, %v1294_v15, %v1081_v16 }
 0x246   : > { %v981_v52 = vpop.permute.xlu1 %980  ;;  %v929_v3 = vpop.permute.xlu0 %928 }
 0x247   : > { %v1278_v13 = vsel %vm354_vm0, %v1262_v43, %v981_v52  ;;  %v1263_v21 = vsel %vm1251_vm7, %v1246_v51, %v929_v3 }
 0x24a   : > { %v1186_v59 = vpop.permute.xlu1 %1185  ;;  %v1135_v41 = vpop.permute.xlu0 %1134 }
 0x24b   : > { %v1344_v34 = vsel %vm1335_vm11, %v1327_v14, %v1186_v59  ;;  %v1328_v7 = vsel %vm1318_vm10, %v1311_v58, %v1135_v41 }
 0x24c   : > { %2138 = vmatprep.mubr.msk.f32.mxu1 %vm1364_vm12, %v1344_v34 }
 0x24e   : > { %v983_v24 = vpop.permute.xlu1 %982  ;;  %v793_v23 = vpop.permute.xlu0 %792 }
 0x24f   : > { %v1279_v33 = vsel %vm354_vm0, %v1263_v21, %v983_v24  ;;  %v1230_v3 = vsel %vm1217_vm5, %v3081_v46, %v793_v23  ;;  %v1976_v21 = vld [vmem:[%s3579_s4] ss:$0 sm:$0xff] }
 0x252   : > { %v1188_v61 = vpop.permute.xlu1 %1187  ;;  %v1034_v11 = vpop.permute.xlu0 %1033 }
 0x253   : > { %v1345_v35 = vsel %vm1335_vm11, %v1328_v7, %v1188_v61  ;;  %v1295_v62 = vsel %vm1284_vm8, %v1278_v13, %v1034_v11 }
 0x254   : > { %2139 = vmatmul.mubr.msk.f32.gmra.mrb[2].mxu1 %vm1364_vm12, %v1345_v35 }
 0x256   : > { %v882_v45 = vpop.permute.xlu1 %881  ;;  %v795_v4 = vpop.permute.xlu0 %794 }
 0x257   : > { %v1247_v39 = vsel %vm1234_vm6, %v1230_v3, %v882_v45  ;;  %v1231_v46 = vsel %vm1217_vm5, %v2850_v55, %v795_v4 }
 0x25a   : > { %v1083_v5 = vpop.permute.xlu1 %1082  ;;  %v1036_v6 = vpop.permute.xlu0 %1035 }
 0x25b   : > { %v1312_v29 = vsel %vm1301_vm9, %v1295_v62, %v1083_v5  ;;  %v1296_v9 = vsel %vm1284_vm8, %v1279_v33, %v1036_v6 }
 0x25e   : > { %v931_v10 = vpop.permute.xlu1 %930  ;;  %v884_v12 = vpop.permute.xlu0 %883 }
 0x25f   : > { %v1264_v31 = vsel %vm1251_vm7, %v1247_v39, %v931_v10  ;;  %v1248_v23 = vsel %vm1234_vm6, %v1231_v46, %v884_v12 }
 0x262   : > { %v1137_v63 = vpop.permute.xlu1 %1136  ;;  %v1085_v44 = vpop.permute.xlu0 %1084 }
 0x263   : > { %v1329_v27 = vsel %vm1318_vm10, %v1312_v29, %v1137_v63  ;;  %v1313_v26 = vsel %vm1301_vm9, %v1296_v9, %v1085_v44 }
 0x266   : > { %v985_v28 = vpop.permute.xlu1 %984  ;;  %v933_v17 = vpop.permute.xlu0 %932 }
 0x267   : > { %v1280_v59 = vsel %vm354_vm0, %v1264_v31, %v985_v28  ;;  %v1265_v56 = vsel %vm1251_vm7, %v1248_v23, %v933_v17 }
 0x26a   : > { %v1190_v8 = vpop.permute.xlu1 %1189  ;;  %v1139_v0 = vpop.permute.xlu0 %1138 }
 0x26b   : > { %v1346_v1 = vsel %vm1335_vm11, %v1329_v27, %v1190_v8  ;;  %v1330_v30 = vsel %vm1318_vm10, %v1313_v26, %v1139_v0 }
 0x26c   : > { %2141 = vmatprep.mubr.msk.f32.mxu1 %vm1364_vm12, %v1346_v1 }
 0x26e   : > { %v987_v25 = vpop.permute.xlu1 %986  ;;  %v797_v20 = vpop.permute.xlu0 %796 }
 0x26f   : > { %v1281_v7 = vsel %vm354_vm0, %v1265_v56, %v987_v25  ;;  %v1232_v10 = vsel %vm1217_vm5, %v3155_v2, %v797_v20 }
 0x272   : > { %v1192_v48 = vpop.permute.xlu1 %1191  ;;  %v1038_v32 = vpop.permute.xlu0 %1037 }
 0x273   : > { %v1347_v50 = vsel %vm1335_vm11, %v1330_v30, %v1192_v48  ;;  %v1297_v41 = vsel %vm1284_vm8, %v1280_v59, %v1038_v32 }
 0x274   : > { %2142 = vmatmul.mubr.msk.f32.gmra.mrb[4].mxu1 %vm1364_vm12, %v1347_v50 }
 0x276   : > { %v886_v19 = vpop.permute.xlu1 %885  ;;  %v799_v37 = vpop.permute.xlu0 %798 }
 0x277   : > { %v1233_v12 = vsel %vm1217_vm5, %v2911_v22, %v799_v37  ;;  %v1249_v63 = vsel %vm1234_vm6, %v1232_v10, %v886_v19 }
 0x27a   : > { %v1087_v49 = vpop.permute.xlu1 %1086  ;;  %v1040_v16 = vpop.permute.xlu0 %1039 }
 0x27b   : > { %v1314_v34 = vsel %vm1301_vm9, %v1297_v41, %v1087_v49  ;;  %v1298_v61 = vsel %vm1284_vm8, %v1281_v7, %v1040_v16 }
 0x27e   : > { %v935_v47 = vpop.permute.xlu1 %934  ;;  %v888_v40 = vpop.permute.xlu0 %887 }
 0x27f   : > { %v1250_v44 = vsel %vm1234_vm6, %v1233_v12, %v888_v40  ;;  %v1266_v18 = vsel %vm1251_vm7, %v1249_v63, %v935_v47 }
 0x282   : > { %v1141_v53 = vpop.permute.xlu1 %1140  ;;  %v1089_v52 = vpop.permute.xlu0 %1088 }
 0x283   : > { %v1331_v54 = vsel %vm1318_vm10, %v1314_v34, %v1141_v53  ;;  %v1315_v11 = vsel %vm1301_vm9, %v1298_v61, %v1089_v52 }
 0x286   : > { %v989_v60 = vpop.permute.xlu1 %988  ;;  %v937_v14 = vpop.permute.xlu0 %936 }
 0x287   : > { %v1267_v42 = vsel %vm1251_vm7, %v1250_v44, %v937_v14  ;;  %v1282_v17 = vsel %vm354_vm0, %v1266_v18, %v989_v60 }
 0x28a   : > { %v1194_v36 = vpop.permute.xlu1 %1193  ;;  %v1143_v57 = vpop.permute.xlu0 %1142 }
 0x28b   : > { %v1348_v24 = vsel %vm1335_vm11, %v1331_v54, %v1194_v36  ;;  %v1332_v35 = vsel %vm1318_vm10, %v1315_v11, %v1143_v57 }
 0x28c   : > { %2144 = vmatprep.mubr.msk.f32.mxu1 %vm1364_vm12, %v1348_v24 }
 0x28e   : > { %v1042_v15 = vpop.permute.xlu1 %1041  ;;  %v991_v58 = vpop.permute.xlu0 %990 }
 0x28f   : > { %v1283_v13 = vsel %vm354_vm0, %v1267_v42, %v991_v58  ;;  %v1299_v62 = vsel %vm1284_vm8, %v1282_v17, %v1042_v15  ;;  %v3431_v42 = vld [vmem:[%s3581_s6] ss:$0 sm:$0xff] }
 0x292   : > { %v1044_v45 = vpop.permute.xlu1 %1043  ;;  %v1196_v5 = vpop.permute.xlu0 %1195 }
 0x293   : > { %v1349_v55 = vsel %vm1335_vm11, %v1332_v35, %v1196_v5  ;;  %v1300_v2 = vsel %vm1284_vm8, %v1283_v13, %v1044_v45 }
 0x294   : > { %2145 = vmatmul.mubr.msk.f32.gmra.mrb[6].mxu1 %vm1364_vm12, %v1349_v55 }
 0x296   : > { %v1093_v4 = vpop.permute.xlu1 %1092  ;;  %v1091_v6 = vpop.permute.xlu0 %1090 }
 0x297   : > { %v1317_v22 = vsel %vm1301_vm9, %v1300_v2, %v1093_v4  ;;  %v1316_v29 = vsel %vm1301_vm9, %v1299_v62, %v1091_v6  ;;  %v2307_v62 = vld [vmem:[%s2697_s12 + $0x8] sm:$0xff] }
 0x29a   : > { %v1147_v43 = vpop.permute.xlu1 %1146  ;;  %v1145_v28 = vpop.permute.xlu0 %1144 }
 0x29b   : > { %v1334_v27 = vsel %vm1318_vm10, %v1317_v22, %v1147_v43  ;;  %v1333_v8 = vsel %vm1318_vm10, %v1316_v29, %v1145_v28  ;;  %v2308_v22 = vld [vmem:[%s2697_s12] sm:$0xff] }
 0x29e   : > { %v1200_v0 = vpop.permute.xlu1 %1199  ;;  %v1198_v1 = vpop.permute.xlu0 %1197 }
 0x29f   : > { %v1351_v38 = vsel %vm1335_vm11, %v1334_v27, %v1200_v0  ;;  %v1350_v51 = vsel %vm1335_vm11, %v1333_v8, %v1198_v1 }
 0x2a0   : > { %2147 = vmatprep.mubr.msk.f32.mxu1 %vm1364_vm12, %v1350_v51 }
 0x2a1   : > { %2148 = vmatmul.mubr.msk.f32.gmra.mrb[8].mxu1 %vm1364_vm12, %v1351_v38 }
 0x2a8   : > { %v2128_v25 = vpop.f32.mrb[20].mxu0 }
 0x2a9   : > { %v1489_v20 = vadd.f32 %v2128_v25, %v1976_v21  ;;  %v1483_v33 = vpop.f32.mrb[21].mxu0 }
 0x2aa   : > { %v1484_v9 = vadd.f32 %v1976_v21, %v1483_v33 }
 0x2ab   : > { %v1563_v30 = vmax.f32 %v1489_v20, 0.0  ;;  %v2310_v20 = vld [vmem:[%s2697_s12 + $0x10] sm:$0xff] }
 0x2ac   : > { %v1562_v26 = vmax.f32 %v1484_v9, 0.0 }
 0x2ae   : > { %2152 = vmatprep.mubr.msk.f32.mxu1 %vm1217_vm5, %v1562_v26 }
 0x2af   : > { %2153 = vmatmul.mubr.msk.f32.vlgmr.msra.gmra.mrb[10].mxu1 %vm1217_vm5, %v1563_v30 }
 0x2c8   : > { %v2131_v48 = vpop.f32.mrb[22].mxu0 }
 0x2c9   : > { %v1499_v32 = vadd.f32 %v2131_v48, %v1976_v21  ;;  %v1493_v50 = vpop.f32.mrb[23].mxu0 }
 0x2ca   : > { %v1494_v19 = vadd.f32 %v1976_v21, %v1493_v50 }
 0x2cb   : > { %v1565_v49 = vmax.f32 %v1499_v32, 0.0 }
 0x2cc   : > { %v1564_v37 = vmax.f32 %v1494_v19, 0.0  ;;  %v2311_v19 = vld [vmem:[%s2697_s12 + $0x28] sm:$0xff] }
 0x2ce   : > { %2155 = vmatprep.mubr.msk.f32.mxu1 %vm1217_vm5, %v1564_v37 }
 0x2cf   : > { %2156 = vmatmul.mubr.msk.f32.gmra.mrb[12].mxu1 %vm1217_vm5, %v1565_v49  ;;  %v2312_v49 = vld [vmem:[%s2697_s12 + $0x20] sm:$0xff] }
 0x2e8   : > { %v2134_v16 = vpop.f32.mrb[24].mxu0 }
 0x2e9   : > { %v1509_v47 = vadd.f32 %v2134_v16, %v1976_v21  ;;  %v1503_v40 = vpop.f32.mrb[25].mxu0 }
 0x2ea   : > { %v1504_v53 = vadd.f32 %v1976_v21, %v1503_v40 }
 0x2eb   : > { %v1567_v3 = vmax.f32 %v1509_v47, 0.0 }
 0x2ec   : > { %v1566_v52 = vmax.f32 %v1504_v53, 0.0 }
 0x2ee   : > { %2158 = vmatprep.mubr.msk.f32.mxu1 %vm1217_vm5, %v1566_v52 }
 0x2ef   : > { %2159 = vmatmul.mubr.msk.f32.gmra.mrb[14].mxu1 %vm1217_vm5, %v1567_v3 }
 0x307   : > { %v2137_v39 = vpop.f32.mrb[0].mxu1 }
 0x308   : > { %v1519_v31 = vadd.f32 %v2137_v39, %v1976_v21  ;;  %v1513_v60 = vpop.f32.mrb[1].mxu1 }
 0x309   : > { %v1514_v14 = vadd.f32 %v1976_v21, %v1513_v60 }
 0x30a   : > { %v1569_v41 = vmax.f32 %v1519_v31, 0.0  ;;  %v2313_v31 = vld [vmem:[%s2697_s12 + $0x38] sm:$0xff] }
 0x30b   : > { %v1568_v59 = vmax.f32 %v1514_v14, 0.0  ;;  %v2314_v14 = vld [vmem:[%s2697_s12 + $0x30] sm:$0xff] }
 0x30d   : > { %2161 = vmatprep.mubr.msk.f32.mxu1 %vm1217_vm5, %v1568_v59 }
 0x30e   : > { %2162 = vmatmul.mubr.msk.f32.gmra.mrb[16].mxu1 %vm1217_vm5, %v1569_v41 }
 0x327   : > { %v2140_v34 = vpop.f32.mrb[2].mxu1 }
 0x328   : > { %v1529_v54 = vadd.f32 %v2140_v34, %v1976_v21  ;;  %v1523_v36 = vpop.f32.mrb[3].mxu1 }
 0x329   : > { %v1524_v57 = vadd.f32 %v1976_v21, %v1523_v36 }
 0x32a   : > { %v1571_v46 = vmax.f32 %v1529_v54, 0.0 }
 0x32b   : > { %v1570_v24 = vmax.f32 %v1524_v57, 0.0 }
 0x32d   : > { %2164 = vmatprep.mubr.msk.f32.mxu1 %vm1217_vm5, %v1570_v24 }
 0x32e   : > { %2165 = vmatmul.mubr.msk.f32.gmra.mrb[18].mxu1 %vm1217_vm5, %v1571_v46  ;;  %v2315_v46 = vld [vmem:[%s2697_s12 + $0x48] sm:$0xff] }
 0x347   : > { %v2143_v23 = vpop.f32.mrb[4].mxu1 }
 0x348   : > { %v1539_v56 = vadd.f32 %v2143_v23, %v1976_v21  ;;  %v1533_v15 = vpop.f32.mrb[5].mxu1 }
 0x349   : > { %v1534_v58 = vadd.f32 %v1976_v21, %v1533_v15 }
 0x34a   : > { %v1573_v61 = vmax.f32 %v1539_v56, 0.0  ;;  %v2316_v56 = vld [vmem:[%s2697_s12 + $0x40] sm:$0xff] }
 0x34b   : > { %v1572_v7 = vmax.f32 %v1534_v58, 0.0 }
 0x34d   : > { %2167 = vmatprep.mubr.msk.f32.mxu1 %vm1217_vm5, %v1572_v7 }
 0x34e   : > { %2168 = vmatmul.mubr.msk.f32.gmra.mrb[20].mxu1 %vm1217_vm5, %v1573_v61 }
 0x367   : > { %v2146_v11 = vpop.f32.mrb[6].mxu1 }
 0x368   : > { %v1549_v35 = vadd.f32 %v2146_v11, %v1976_v21  ;;  %v1543_v45 = vpop.f32.mrb[7].mxu1 }
 0x369   : > { %v1544_v5 = vadd.f32 %v1976_v21, %v1543_v45 }
 0x36a   : > { %v1575_v4 = vmax.f32 %v1549_v35, 0.0 }
 0x36b   : > { %v1574_v55 = vmax.f32 %v1544_v5, 0.0  ;;  %v2317_v5 = vld [vmem:[%s2697_s12 + $0x58] sm:$0xff] }
 0x36d   : > { %2170 = vmatprep.mubr.msk.f32.mxu1 %vm1217_vm5, %v1574_v55 }
 0x36e   : > { %2171 = vmatmul.mubr.msk.f32.gmra.mrb[22].mxu1 %vm1217_vm5, %v1575_v4  ;;  %v2318_v4 = vld [vmem:[%s2697_s12 + $0x50] sm:$0xff] }
 0x374   : > { %v2149_v6 = vpop.f32.mrb[8].mxu1 }
 0x375   : > { %v1559_v10 = vadd.f32 %v2149_v6, %v1976_v21  ;;  %v1553_v12 = vpop.f32.mrb[9].mxu1 }
 0x376   : > { %v1554_v63 = vadd.f32 %v1976_v21, %v1553_v12  ;;  %v2309_v21 = vld [vmem:[%s2697_s12 + $0x18] sm:$0xff] }
 0x377   : > { %v1577_v18 = vmax.f32 %v1559_v10, 0.0 }
 0x378   : > { %v1576_v44 = vmax.f32 %v1554_v63, 0.0 }
 0x37a   : > { %2173 = vmatprep.mubr.msk.f32.mxu1 %vm1217_vm5, %v1576_v44 }
 0x37b   : > { %2174 = vmatmul.mubr.msk.f32.gmra.mrb[24].mxu1 %vm1217_vm5, %v1577_v18 }
 0x382   : > { %v2154_v43 = vpop.f32.mrb[10].mxu1 }
 0x383   : > { %v1709_v28 = vadd.f32 %v2154_v43, %v3431_v42  ;;  %v1703_v17 = vpop.f32.mrb[11].mxu1 }
 0x384   : > { %v1704_v13 = vadd.f32 %v3431_v42, %v1703_v17 }
 0x385   : > { %v1783_v2 = vadd.f32 %v2307_v62, %v1709_v28  ;;  %v2319_v28 = vld [vmem:[%s2697_s12 + $0x68] sm:$0xff] }
 0x386   : > { %v1782_v29 = vadd.f32 %v2308_v22, %v1704_v13  ;;  %v2320_v13 = vld [vmem:[%s2697_s12 + $0x60] sm:$0xff] }
 0x387   : > { %v1799_v27 = vmax.f32 %v1783_v2, 0.0 }
 0x388   : > { %v1798_v8 = vmax.f32 %v1782_v29, 0.0 }
 0x389   : > { %1815 = vst.msk [vmem:[%s3439_s7 + $0x8] sm:$0xff] %vm354_vm0, %v1799_v27 }
 0x38a   : > { %1814 = vst.msk [vmem:[%s3439_s7] sm:$0xff] %vm354_vm0, %v1798_v8 }
 0x3a2   : > { %v2157_v0 = vpop.f32.mrb[12].mxu1 }
 0x3a3   : > { %v1719_v1 = vadd.f32 %v2157_v0, %v3431_v42  ;;  %v1713_v38 = vpop.f32.mrb[13].mxu1 }
 0x3a4   : > { %v1714_v51 = vadd.f32 %v3431_v42, %v1713_v38 }
 0x3a5   : > { %v1785_v25 = vadd.f32 %v2309_v21, %v1719_v1  ;;  %v2321_v1 = vld [vmem:[%s2697_s12 + $0x78] sm:$0xff] }
 0x3a6   : > { %v1784_v33 = vadd.f32 %v2310_v20, %v1714_v51  ;;  %v2322_v51 = vld [vmem:[%s2697_s12 + $0x70] sm:$0xff]  ;;  %s2353_s12 = scalar_lea.vmem %s3500_s10, 2048 }
 0x3a7   : > { %v1801_v9 = vmax.f32 %v1785_v25, 0.0  ;;  %p2354_p0 = scmp.ne.s32.totalorder %s3500_s10, %s2353_s12  ;;  %p2361_p11 = scmp.lt.s32.totalorder %s2359_s21, %s2353_s12 }
 0x3a8   : > { %v1800_v26 = vmax.f32 %v1784_v33, 0.0 }
 0x3a9   : > { %1817 = vst.msk [vmem:[%s3439_s7 + $0x18] sm:$0xff] %vm354_vm0, %v1801_v9  ;;  %p2355_p6 = pnand %p2354_p0, %p3607_p1  ;;  %p2362_p13 = por %p2361_p11, %p2360_p3 }
 0x3aa   : > { %1816 = vst.msk [vmem:[%s3439_s7 + $0x10] sm:$0xff] %vm354_vm0, %v1800_v26 }
 0x3ab   : > { %p2356_p9 = pneg %p2355_p6 }
 0x3ad   : > { %p2363_p5 = pnand %p2362_p13, %p2356_p9 }
 0x3c2   : > { %v2160_v30 = vpop.f32.mrb[14].mxu1 }
 0x3c3   : > { %v1729_v48 = vadd.f32 %v2160_v30, %v3431_v42  ;;  %v1723_v32 = vpop.f32.mrb[15].mxu1 }
 0x3c4   : > { %v1724_v50 = vadd.f32 %v3431_v42, %v1723_v32 }
 0x3c5   : > { %v1787_v37 = vadd.f32 %v2311_v19, %v1729_v48 }
 0x3c6   : > { %v1786_v16 = vadd.f32 %v2312_v49, %v1724_v50 }
 0x3c7   : > { %v1803_v47 = vmax.f32 %v1787_v37, 0.0 }
 0x3c8   : > { %v1802_v40 = vmax.f32 %v1786_v16, 0.0 }
 0x3c9   : > { %1819 = vst.msk [vmem:[%s3439_s7 + $0x28] sm:$0xff] %vm354_vm0, %v1803_v47 }
 0x3ca   : > { %1818 = vst.msk [vmem:[%s3439_s7 + $0x20] sm:$0xff] %vm354_vm0, %v1802_v40 }
 0x3e1   : > { %v2163_v53 = vpop.f32.mrb[16].mxu1 }
 0x3e2   : > { %v1739_v52 = vadd.f32 %v2163_v53, %v3431_v42  ;;  %v1733_v3 = vpop.f32.mrb[17].mxu1 }
 0x3e3   : > { %v1734_v39 = vadd.f32 %v3431_v42, %v1733_v3 }
 0x3e4   : > { %v1789_v60 = vadd.f32 %v2313_v31, %v1739_v52 }
 0x3e5   : > { %v1788_v59 = vadd.f32 %v2314_v14, %v1734_v39 }
 0x3e6   : > { %v1805_v41 = vmax.f32 %v1789_v60, 0.0 }
 0x3e7   : > { %v1804_v34 = vmax.f32 %v1788_v59, 0.0 }
 0x3e8   : > { %1821 = vst.msk [vmem:[%s3439_s7 + $0x38] sm:$0xff] %vm354_vm0, %v1805_v41 }
 0x3e9   : > { %1820 = vst.msk [vmem:[%s3439_s7 + $0x30] sm:$0xff] %vm354_vm0, %v1804_v34 }
 0x401   : > { %v2166_v54 = vpop.f32.mrb[18].mxu1 }
 0x402   : > { %v1749_v36 = vadd.f32 %v2166_v54, %v3431_v42  ;;  %v1743_v57 = vpop.f32.mrb[19].mxu1 }
 0x403   : > { %v1744_v24 = vadd.f32 %v3431_v42, %v1743_v57 }
 0x404   : > { %v1791_v23 = vadd.f32 %v2315_v46, %v1749_v36 }
 0x405   : > { %v1790_v15 = vadd.f32 %v2316_v56, %v1744_v24 }
 0x406   : > { %v1807_v58 = vmax.f32 %v1791_v23, 0.0 }
 0x407   : > { %v1806_v7 = vmax.f32 %v1790_v15, 0.0 }
 0x408   : > { %1823 = vst.msk [vmem:[%s3439_s7 + $0x48] sm:$0xff] %vm354_vm0, %v1807_v58 }
 0x409   : > { %1822 = vst.msk [vmem:[%s3439_s7 + $0x40] sm:$0xff] %vm354_vm0, %v1806_v7 }
 0x421   : > { %v2169_v61 = vpop.f32.mrb[20].mxu1 }
 0x422   : > { %v1759_v11 = vadd.f32 %v2169_v61, %v3431_v42  ;;  %v1753_v35 = vpop.f32.mrb[21].mxu1 }
 0x423   : > { %v1754_v45 = vadd.f32 %v3431_v42, %v1753_v35 }
 0x424   : > { %v1793_v55 = vadd.f32 %v2317_v5, %v1759_v11 }
 0x425   : > { %v1792_v6 = vadd.f32 %v2318_v4, %v1754_v45 }
 0x426   : > { %v1809_v10 = vmax.f32 %v1793_v55, 0.0 }
 0x427   : > { %v1808_v12 = vmax.f32 %v1792_v6, 0.0 }
 0x428   : > { %1825 = vst.msk [vmem:[%s3439_s7 + $0x58] sm:$0xff] %vm354_vm0, %v1809_v10 }
 0x429   : > { %1824 = vst.msk [vmem:[%s3439_s7 + $0x50] sm:$0xff] %vm354_vm0, %v1808_v12 }
 0x441   : > { %v2172_v63 = vpop.f32.mrb[22].mxu1 }
 0x442   : > { %v1769_v44 = vadd.f32 %v2172_v63, %v3431_v42  ;;  %v1763_v18 = vpop.f32.mrb[23].mxu1 }
 0x443   : > { %v1764_v43 = vadd.f32 %v3431_v42, %v1763_v18 }
 0x444   : > { %v1795_v17 = vadd.f32 %v2319_v28, %v1769_v44 }
 0x445   : > { %v1794_v62 = vadd.f32 %v2320_v13, %v1764_v43 }
 0x446   : > { %v1811_v2 = vmax.f32 %v1795_v17, 0.0 }
 0x447   : > { %v1810_v22 = vmax.f32 %v1794_v62, 0.0 }
 0x448   : > { %1827 = vst.msk [vmem:[%s3439_s7 + $0x68] sm:$0xff] %vm354_vm0, %v1811_v2 }
 0x449   : > { %1826 = vst.msk [vmem:[%s3439_s7 + $0x60] sm:$0xff] %vm354_vm0, %v1810_v22 }
 0x44e   : > { %v2175_v29 = vpop.f32.mrb[24].mxu1 }
 0x44f   : > { %v1779_v27 = vadd.f32 %v2175_v29, %v3431_v42  ;;  %v1773_v8 = vpop.f32.mrb[25].mxu1 }
 0x450   : > { %v1774_v0 = vadd.f32 %v3431_v42, %v1773_v8 }
 0x451   : > { %v1797_v38 = vadd.f32 %v2321_v1, %v1779_v27 }
 0x452   : > { %v1796_v21 = vadd.f32 %v2322_v51, %v1774_v0 }
 0x453   : > { %v1813_v25 = vmax.f32 %v1797_v38, 0.0 }
 0x454   : > { %v1812_v20 = vmax.f32 %v1796_v21, 0.0 }
 0x455   : > { %1829 = vst.msk [vmem:[%s3439_s7 + $0x78] sm:$0xff] %vm354_vm0, %v1813_v25 }
 0x456   : > { %1828 = vst.msk [vmem:[%s3439_s7 + $0x70] sm:$0xff] %vm354_vm0, %v1812_v20 }
 0x457   : > { %2366 = shalt.err (!%p2363_p5)
}
 0x458   : > { %s2367_s17 = scalar_lea.hbm %s3505_s22, 2048  ;;  %s2371_s30 = scalar_lea.hbm %s3606_s20, 8192 }
 0x459   : > { %p2368_p8 = scmp.ne.s32.totalorder %s3505_s22, %s2367_s17  ;;  %p2372_p7 = scmp.lt.u32.totalorder %s3505_s22, %s3606_s20 }
 0x45a   : > { %p2373_p2 = scmp.lt.u32.totalorder %s2371_s30, %s2367_s17  ;;  %p2375_p0 = scmp.lt.u32.totalorder %s2367_s17, %s3505_s22 }
 0x45b   : > { %p2369_p10 = pnand %p2368_p8, %p3607_p1 }
 0x45c   : > { %p2374_p4 = por %p2373_p2, %p2372_p7 }
 0x45d   : > { %p2370_p12 = pneg %p2369_p10 }
 0x45e   : > { %p2376_p6 = por %p2375_p0, %p2374_p4 }
 0x460   : > { %p2377_p9 = pnand %p2376_p6, %p2370_p12 }
 0x462   : > { %2380 = shalt.err (!%p2377_p9)
}
 0x463   : > { %s2489_s12 = smov 128  }
 0x464   : > { %2196 = dma.vmem_to_hbm [thread:$0]  (%p3607_p1), %s3500_s10, 2048, %s3505_s22, %s3513_s15, %s2489_s12, %s2489_s12, %s2482_s16  }
 0x465 PF: > { %p2207_p3 = scmp.ge.s32.totalorder %s2475_s11, 2  ;;  %s1862_s18 = sand.u32 1, %s2435_s24  }
 0x466   : > { %p3608_p11 = scmp.ne.s32.totalorder %s3601_s9, 0  ;;  %s1863_s21 = scalar_lea.sflag [#allocation4], %s1862_s18 }
 0x468   : > { %p2203_p13 = pnand %p2207_p3, %p3608_p11 }
 0x46a   : > { %2430 = dma.done.wait (!%p2203_p13), %s1863_s21, 2048  }
 0x46b   : > { %2432 = vsyncadd (!%p2203_p13), %s1863_s21, 4294965248  ;;  %s23_s11 = sadd.s32 1, %s2475_s11   ;;  %s3609_s23 = smov %s2617_s27 }
 0x46c   : > { %p20_p5 = scmp.ge.s32.totalorder %s23_s11, 6   ;;  %s3610_s30 = sld [smem:[#allocation8_spill]] }
 0x46d   : > { %s3611_s8 = sld [smem:[#allocation9_spill]]  ;;  %s3612_s9 = sld [smem:[#allocation10_spill]] }
 0x46e   : > { %s3613_s10 = sld [smem:[#allocation11_spill]]  ;;  %s3614_s24 = smov %s2439_s25 }
 0x46f   : > { %s3615_s25 = smov %s2443_s26  ;;  %s3616_s26 = smov %s2620_s14 }
 0x470   : > { %s3617_s27 = smov %s2451_s28  ;;  %s3618_s28 = smov %s2455_s29 }
 0x471   : > { %s3619_s29 = smov %s3609_s23  ;;  %22 = sbr.rel (!%p20_p5) target bundleno = 11 (0xb), region = 96 }
 0x478   :  { %1868 = vsyncpa [#allocation3], 1 }
 0x479   :  { %1870 = vsyncpa [#allocation3 + $0x1], 1 }
 0x47a   :  { %1871 = vsyncpa [#allocation4], 1 }
 0x47b   :  { %1873 = vsyncpa [#allocation4 + $0x1], 1 }

</bundles_post_ra>
